<compile_context>
chip_gen: v7x
topology: tpu7x:2x2x1
jax: 0.10.0
libtpu: 0.0.40
codegen_flags: <defaults>
</compile_context>

<pallas_src>
import jax
import jax.numpy as jnp
from jax.experimental import pallas as pl
from jax.experimental.pallas import tpu as pltpu

BN_EPS = 1e-5
W3_PAD = 128  # fc3 has 3 output features; pad its weight columns for the MXU


def decoder_kernel(x_ref, w1_ref, t1_ref, w2_ref, t2_ref, w3_ref, b3_ref, o_ref):
    # fc1 (+ folded bn1 scale) + shift + relu  -- bf16 MXU inputs, f32 accumulate
    x = x_ref[...].astype(jnp.bfloat16)
    h1 = jnp.dot(x, w1_ref[...], preferred_element_type=jnp.float32)
    h1 = jnp.maximum(h1 + t1_ref[...], 0.0)
    # fc2 (+ folded bn2 scale) + shift + relu
    h2 = jnp.dot(h1.astype(jnp.bfloat16), w2_ref[...],
                 preferred_element_type=jnp.float32)
    h2 = jnp.maximum(h2 + t2_ref[...], 0.0)
    # fc3 (weights zero-padded to W3_PAD columns) + bias + tanh; keep lanes 0:3
    h3 = jnp.dot(h2.astype(jnp.bfloat16), w3_ref[...],
                 preferred_element_type=jnp.float32)
    o_ref[...] = jnp.tanh(h3[:, :3] + b3_ref[...])


def _choose_block_b(B):
    """Batch tile: big & 128-aligned for MXU rows, >=2 grid steps when possible."""
    for cand in (512, 256, 128):
        if B >= 2 * cand:
            return cand
    if B > 128:
        return 128
    # tiny batches: single tile, rounded up to a sublane multiple
    return max(8, -(-B // 8) * 8)


@jax.jit
def pointfilter_decoder_forward(x, params):
    """x: (B, 1024) float32 -> (B, 3) float32."""
    w1, t1, w2, t2, w3p, b3 = params
    B, D_in = x.shape
    assert D_in == 1024

    block_b = _choose_block_b(B)
    Bp = -(-B // block_b) * block_b
    if Bp != B:
        x = jnp.pad(x, ((0, Bp - B), (0, 0)))

    full = lambda i: (0, 0)  # parameters are replicated across batch tiles

    out = pl.pallas_call(
        decoder_kernel,
        out_shape=jax.ShapeDtypeStruct((Bp, 3), jnp.float32),
        grid_spec=pltpu.PrefetchScalarGridSpec(
            num_scalar_prefetch=0,
            grid=(Bp // block_b,),
            in_specs=[
                pl.BlockSpec((block_b, 1024), lambda i: (i, 0)),  # x tile (f32)
                pl.BlockSpec((1024, 512), full),                  # W1*s1 (bf16)
                pl.BlockSpec((1, 512), full),                     # t1 (f32)
                pl.BlockSpec((512, 256), full),                   # W2*s2 (bf16)
                pl.BlockSpec((1, 256), full),                     # t2 (f32)
                pl.BlockSpec((256, W3_PAD), full),                # W3 padded (bf16)
                pl.BlockSpec((1, 3), full),                       # b3 (f32)
            ],
            out_specs=pl.BlockSpec((block_b, 3), lambda i: (i, 0)),
        ),
        compiler_params=pltpu.CompilerParams(
            dimension_semantics=("parallel",)),
    )(x, w1, t1, w2, t2, w3p, b3)

    return out[:B] if Bp != B else out


def init_params(key):
    """Deterministic synthetic parameters matching the nn.Module shapes."""
    ks = jax.random.split(key, 14)

    def linear(kw, kb, d_in, d_out):
        lim = 1.0 / jnp.sqrt(d_in)
        w = jax.random.uniform(kw, (d_in, d_out), jnp.float32, -lim, lim)
        b = jax.random.uniform(kb, (d_out,), jnp.float32, -lim, lim)
        return w, b

    w1, b1 = linear(ks[0], ks[1], 1024, 512)
    w2, b2 = linear(ks[2], ks[3], 512, 256)
    w3, b3 = linear(ks[4], ks[5], 256, 3)

    def bn(kg, kb, km, kv, d):
        gamma = 1.0 + 0.1 * jax.random.normal(kg, (d,), jnp.float32)
        beta = 0.1 * jax.random.normal(kb, (d,), jnp.float32)
        mean = 0.1 * jax.random.normal(km, (d,), jnp.float32)
        var = jnp.abs(1.0 + 0.1 * jax.random.normal(kv, (d,), jnp.float32))
        return gamma, beta, mean, var

    g1, be1, m1, v1 = bn(ks[6], ks[7], ks[8], ks[9], 512)
    g2, be2, m2, v2 = bn(ks[10], ks[11], ks[12], ks[13], 256)

    # Fold eval-mode BN + linear bias:  scale into weight columns, keep shift.
    s1 = g1 / jnp.sqrt(v1 + BN_EPS)
    t1 = (b1 - m1) * s1 + be1
    s2 = g2 / jnp.sqrt(v2 + BN_EPS)
    t2 = (b2 - m2) * s2 + be2

    w1f = (w1 * s1[None, :]).astype(jnp.bfloat16)
    w2f = (w2 * s2[None, :]).astype(jnp.bfloat16)
    w3p = jnp.zeros((256, W3_PAD), jnp.bfloat16).at[:, :3].set(
        w3.astype(jnp.bfloat16))

    params = (w1f, t1.reshape(1, -1),
              w2f, t2.reshape(1, -1),
              w3p, b3.reshape(1, 3))
    raw = (w1, b1, w2, b2, w3, b3, g1, be1, m1, v1, g2, be2, m2, v2)
    return params, raw


def reference_forward(x, raw):
    """Pure-JAX f32 reference mirroring the PyTorch eval-mode forward."""
    (w1, b1, w2, b2, w3, b3, g1, be1, m1, v1, g2, be2, m2, v2) = raw
    h = x @ w1 + b1
    h = (h - m1) / jnp.sqrt(v1 + BN_EPS) * g1 + be1
    h = jnp.maximum(h, 0.0)
    h = h @ w2 + b2
    h = (h - m2) / jnp.sqrt(v2 + BN_EPS) * g2 + be2
    h = jnp.maximum(h, 0.0)
    return jnp.tanh(h @ w3 + b3)


if __name__ == "__main__":
    key = jax.random.PRNGKey(0)
    k_param, k_x = jax.random.split(key)

    params, raw = init_params(k_param)

    B = 16  # small batch for the smoke test
    x = jax.random.normal(k_x, (B, 1024), jnp.float32)

    out = jax.block_until_ready(pointfilter_decoder_forward(x, params))

    ref = reference_forward(x, raw)
    assert out.shape == (B, 3)
    max_err = float(jnp.max(jnp.abs(out - ref)))
    # bf16 MXU inputs (f32 accumulation) => relaxed tolerance vs. the f32 reference
    assert max_err < 3e-2, max_err

    print("KERNEL_OK")
</pallas_src>

<mosaic_0001>
module attributes {stable_mosaic.version = 11 : i64} {
  func.func @decoder_kernel(%arg0: i32, %arg1: memref<16x1024xf32, #tpu.memory_space<vmem>>, %arg2: memref<1024x512xbf16, #tpu.memory_space<vmem>>, %arg3: memref<1x512xf32, #tpu.memory_space<vmem>>, %arg4: memref<512x256xbf16, #tpu.memory_space<vmem>>, %arg5: memref<1x256xf32, #tpu.memory_space<vmem>>, %arg6: memref<256x128xbf16, #tpu.memory_space<vmem>>, %arg7: memref<1x3xf32, #tpu.memory_space<vmem>>, %arg8: memref<16x3xf32, #tpu.memory_space<vmem>>) attributes {dimension_semantics = [#tpu.dimension_semantics<parallel>], iteration_bounds = array<i64: 1>, scalar_prefetch = 0 : i64, scratch_operands = 0 : i64, tpu.core_type = #tpu.core_type<tc>, window_params = [{transform_indices = @transform_0, window_bounds = array<i64: 16, 1024>}, {pipeline_mode = #tpu.pipeline_mode<synchronous>, transform_indices = @transform_1, window_bounds = array<i64: 1024, 512>}, {pipeline_mode = #tpu.pipeline_mode<synchronous>, transform_indices = @transform_2, window_bounds = array<i64: 1, 512>}, {pipeline_mode = #tpu.pipeline_mode<synchronous>, transform_indices = @transform_3, window_bounds = array<i64: 512, 256>}, {pipeline_mode = #tpu.pipeline_mode<synchronous>, transform_indices = @transform_4, window_bounds = array<i64: 1, 256>}, {pipeline_mode = #tpu.pipeline_mode<synchronous>, transform_indices = @transform_5, window_bounds = array<i64: 256, 128>}, {pipeline_mode = #tpu.pipeline_mode<synchronous>, transform_indices = @transform_6, window_bounds = array<i64: 1, 3>}, {transform_indices = @transform_7, window_bounds = array<i64: 16, 3>}]} {
    %c0 = arith.constant 0 : index
    %c0_0 = arith.constant 0 : index
    %0 = vector.load %arg1[%c0, %c0_0] : memref<16x1024xf32, #tpu.memory_space<vmem>>, vector<16x1024xf32>
    %1 = arith.truncf %0 : vector<16x1024xf32> to vector<16x1024xbf16>
    %c0_1 = arith.constant 0 : index
    %c0_2 = arith.constant 0 : index
    %2 = vector.load %arg2[%c0_1, %c0_2] : memref<1024x512xbf16, #tpu.memory_space<vmem>>, vector<1024x512xbf16>
    %cst = arith.constant dense<0.000000e+00> : vector<16x512xf32>
    %3 = tpu.matmul %1, %2, %cst {dimension_numbers = #tpu.dot_dimension_numbers<[1], [0], [0], [1], [0, 0, 1, 1], [], []>} : vector<16x1024xbf16>, vector<1024x512xbf16>, vector<16x512xf32> -> vector<16x512xf32>
    %c0_3 = arith.constant 0 : index
    %c0_4 = arith.constant 0 : index
    %4 = vector.load %arg3[%c0_3, %c0_4] : memref<1x512xf32, #tpu.memory_space<vmem>>, vector<1x512xf32>
    %5 = vector.broadcast %4 : vector<1x512xf32> to vector<16x512xf32>
    %6 = arith.addf %3, %5 : vector<16x512xf32>
    %cst_5 = arith.constant 0.000000e+00 : f32
    %7 = vector.broadcast %cst_5 : f32 to vector<16x512xf32>
    %8 = arith.maximumf %6, %7 : vector<16x512xf32>
    %9 = arith.truncf %8 : vector<16x512xf32> to vector<16x512xbf16>
    %c0_6 = arith.constant 0 : index
    %c0_7 = arith.constant 0 : index
    %10 = vector.load %arg4[%c0_6, %c0_7] : memref<512x256xbf16, #tpu.memory_space<vmem>>, vector<512x256xbf16>
    %cst_8 = arith.constant dense<0.000000e+00> : vector<16x256xf32>
    %11 = tpu.matmul %9, %10, %cst_8 {dimension_numbers = #tpu.dot_dimension_numbers<[1], [0], [0], [1], [0, 0, 1, 1], [], []>} : vector<16x512xbf16>, vector<512x256xbf16>, vector<16x256xf32> -> vector<16x256xf32>
    %c0_9 = arith.constant 0 : index
    %c0_10 = arith.constant 0 : index
    %12 = vector.load %arg5[%c0_9, %c0_10] : memref<1x256xf32, #tpu.memory_space<vmem>>, vector<1x256xf32>
    %13 = vector.broadcast %12 : vector<1x256xf32> to vector<16x256xf32>
    %14 = arith.addf %11, %13 : vector<16x256xf32>
    %cst_11 = arith.constant 0.000000e+00 : f32
    %15 = vector.broadcast %cst_11 : f32 to vector<16x256xf32>
    %16 = arith.maximumf %14, %15 : vector<16x256xf32>
    %17 = arith.truncf %16 : vector<16x256xf32> to vector<16x256xbf16>
    %c0_12 = arith.constant 0 : index
    %c0_13 = arith.constant 0 : index
    %18 = vector.load %arg6[%c0_12, %c0_13] : memref<256x128xbf16, #tpu.memory_space<vmem>>, vector<256x128xbf16>
    %cst_14 = arith.constant dense<0.000000e+00> : vector<16x128xf32>
    %19 = tpu.matmul %17, %18, %cst_14 {dimension_numbers = #tpu.dot_dimension_numbers<[1], [0], [0], [1], [0, 0, 1, 1], [], []>} : vector<16x256xbf16>, vector<256x128xbf16>, vector<16x128xf32> -> vector<16x128xf32>
    %20 = vector.extract_strided_slice %19 {offsets = [0, 0], sizes = [16, 3], strides = [1, 1]} : vector<16x128xf32> to vector<16x3xf32>
    %c0_15 = arith.constant 0 : index
    %c0_16 = arith.constant 0 : index
    %21 = vector.load %arg7[%c0_15, %c0_16] : memref<1x3xf32, #tpu.memory_space<vmem>>, vector<1x3xf32>
    %22 = vector.broadcast %21 : vector<1x3xf32> to vector<16x3xf32>
    %23 = arith.addf %20, %22 : vector<16x3xf32>
    %24 = math.tanh %23 : vector<16x3xf32>
    %c0_17 = arith.constant 0 : index
    %c0_18 = arith.constant 0 : index
    %25 = vector.load %arg8[%c0_17, %c0_18] : memref<16x3xf32, #tpu.memory_space<vmem>>, vector<16x3xf32>
    tpu.vector_store %arg8[%c0_17, %c0_18], %24 {strides = array<i32>} : memref<16x3xf32, #tpu.memory_space<vmem>>, vector<16x3xf32>,
    return
  }
  func.func @transform_0(%arg0: i32) -> (i32, i32) {
    %c0_i32 = arith.constant 0 : i32
    %c0_i32_0 = arith.constant 0 : i32
    return %arg0, %c0_i32 : i32, i32
  }
  func.func @transform_1(%arg0: i32) -> (i32, i32) {
    %c0_i32 = arith.constant 0 : i32
    %c0_i32_0 = arith.constant 0 : i32
    %c0_i32_1 = arith.constant 0 : i32
    return %c0_i32, %c0_i32_0 : i32, i32
  }
  func.func @transform_2(%arg0: i32) -> (i32, i32) {
    %c0_i32 = arith.constant 0 : i32
    %c0_i32_0 = arith.constant 0 : i32
    %c0_i32_1 = arith.constant 0 : i32
    return %c0_i32, %c0_i32_0 : i32, i32
  }
  func.func @transform_3(%arg0: i32) -> (i32, i32) {
    %c0_i32 = arith.constant 0 : i32
    %c0_i32_0 = arith.constant 0 : i32
    %c0_i32_1 = arith.constant 0 : i32
    return %c0_i32, %c0_i32_0 : i32, i32
  }
  func.func @transform_4(%arg0: i32) -> (i32, i32) {
    %c0_i32 = arith.constant 0 : i32
    %c0_i32_0 = arith.constant 0 : i32
    %c0_i32_1 = arith.constant 0 : i32
    return %c0_i32, %c0_i32_0 : i32, i32
  }
  func.func @transform_5(%arg0: i32) -> (i32, i32) {
    %c0_i32 = arith.constant 0 : i32
    %c0_i32_0 = arith.constant 0 : i32
    %c0_i32_1 = arith.constant 0 : i32
    return %c0_i32, %c0_i32_0 : i32, i32
  }
  func.func @transform_6(%arg0: i32) -> (i32, i32) {
    %c0_i32 = arith.constant 0 : i32
    %c0_i32_0 = arith.constant 0 : i32
    %c0_i32_1 = arith.constant 0 : i32
    return %c0_i32, %c0_i32_0 : i32, i32
  }
  func.func @transform_7(%arg0: i32) -> (i32, i32) {
    %c0_i32 = arith.constant 0 : i32
    %c0_i32_0 = arith.constant 0 : i32
    return %arg0, %c0_i32 : i32, i32
  }
}

</mosaic_0001>

<bundles_post_ra>
// kernel: pointfilter_decoder_forward.1
= control target key start
LH: loop header
LB: loop body
LE: loop exit
PB: predicated region body
PF: predicated region fallthrough
CT: control target
= control target key end

     0   :  { %12 = vsyncpa [#allocation3], 0  ;;  %s3871_s0 = inlined_call_operand.hbm [shape: f32[16,1024], index: 0, kind: input, shape index: {}]   ;;  %s3872_s1 = inlined_call_operand.hbm [shape: bf16[1024,512], index: 1, kind: input, shape index: {}]   ;;  %s3873_s2 = inlined_call_operand.vmem [shape: f32[1,512], index: 2, kind: input, shape index: {}]   ;;  %s3874_s3 = inlined_call_operand.hbm [shape: bf16[512,256], index: 3, kind: input, shape index: {}]   ;;  %s3875_s4 = inlined_call_operand.vmem [shape: f32[1,256], index: 4, kind: input, shape index: {}]   ;;  %s3876_s5 = inlined_call_operand.hbm [shape: bf16[256,128], index: 5, kind: input, shape index: {}]   ;;  %s3877_s6 = inlined_call_operand.vmem [shape: f32[1,3], index: 6, kind: input, shape index: {}]   ;;  %s3878_s7 = inlined_call_operand.vmem [shape: f32[16,3], index: 7, kind: output, shape index: {}]  }
   0x1   :  { %13 = vsyncpa [#allocation5], 0 }
   0x2   :  { %14 = vsyncpa [#allocation8], 0  ;;  %s3702_s24 = smov [#allocation4]   ;;  %s3608_s28 = scalar_lea.hbm %s3872_s1, 32768 }
   0x3   :  { %s32_s25 = sshll.u32 %s3702_s24, 4  ;;  %p3609_p0 = scmp.ne.s32.totalorder %s3872_s1, %s3608_s28  ;;  %s33_s25 = int_to_ptr.vmem [resolvable:$true] %s32_s25 }
   0x4   :  { %p3612_p1 = scmp.lt.u32.totalorder %s3608_s28, %s3872_s1 }
   0x6   :  { %p3614_p2 = pnand %p3612_p1, %p3609_p0 }
   0x8   :  { %3617 = shalt.err (!%p3614_p2)
}
   0x9   :  { %s3618_s10 = scalar_lea.vmem %s33_s25, 32768  ;;  %p3623_p4 = scmp.lt.s32.totalorder %s33_s25, %s33_s25 }
   0xa   :  { %p3619_p3 = scmp.ne.s32.totalorder %s33_s25, %s3618_s10  ;;  %p3624_p5 = scmp.lt.s32.totalorder %s3618_s10, %s3618_s10 }
   0xc   :  { %p3625_p6 = por %p3624_p5, %p3623_p4 }
   0xe   :  { %p3626_p7 = pnand %p3625_p6, %p3619_p3 }
  0x10   :  { %3629 = shalt.err (!%p3626_p7)
}
  0x11   :  { %s3703_s11 = smov 256   ;;  %s3704_s12 = smov 16  }
  0x12   :  { %38 = dma.hbm_to_vmem [thread:$0]  %s3872_s1, 32768, %s33_s25, [#allocation5], %s3703_s11, %s3703_s11, %s3704_s12  }
  0x13   :  { %s3705_s15 = smov [#allocation2]   ;;  %s3630_s19 = scalar_lea.hbm %s3871_s0, 2048 }
  0x14   :  { %s20_s16 = sshll.u32 %s3705_s15, 4  ;;  %p3631_p8 = scmp.ne.s32.totalorder %s3871_s0, %s3630_s19  ;;  %s21_s16 = int_to_ptr.vmem [resolvable:$true] %s20_s16 }
  0x15   :  { %p3634_p9 = scmp.lt.u32.totalorder %s3630_s19, %s3871_s0 }
  0x17   :  { %p3636_p10 = pnand %p3634_p9, %p3631_p8 }
  0x19   :  { %3639 = shalt.err (!%p3636_p10)
}
  0x1a   :  { %s3640_s24 = scalar_lea.vmem %s21_s16, 2048  ;;  %p3645_p12 = scmp.lt.s32.totalorder %s21_s16, %s21_s16 }
  0x1b   :  { %p3641_p11 = scmp.ne.s32.totalorder %s21_s16, %s3640_s24  ;;  %p3646_p13 = scmp.lt.s32.totalorder %s3640_s24, %s3640_s24 }
  0x1d   :  { %p3647_p0 = por %p3646_p13, %p3645_p12 }
  0x1f   :  { %p3648_p1 = pnand %p3647_p0, %p3641_p11 }
  0x21   :  { %3651 = shalt.err (!%p3648_p1)
}
  0x22   :  { %s3706_s1 = smov 1024   ;;  %s3707_s25 = smov 64  }
  0x23   :  { %26 = dma.hbm_to_vmem [thread:$0]  %s3871_s0, 2048, %s21_s16, [#allocation3], %s3706_s1, %s3706_s1, %s3707_s25  }
  0x24   :  { %s3708_s28 = smov [#allocation6]   ;;  %s3652_s9 = scalar_lea.hbm %s3874_s3, 8192 }
  0x25   :  { %s46_s29 = sshll.u32 %s3708_s28, 4  ;;  %p3653_p2 = scmp.ne.s32.totalorder %s3874_s3, %s3652_s9  ;;  %s47_s29 = int_to_ptr.vmem [resolvable:$true] %s46_s29 }
  0x26   :  { %p3656_p3 = scmp.lt.u32.totalorder %s3652_s9, %s3874_s3 }
  0x28   :  { %p3658_p4 = pnand %p3656_p3, %p3653_p2 }
  0x2a   :  { %3661 = shalt.err (!%p3658_p4)
}
  0x2b   :  { %s3662_s14 = scalar_lea.vmem %s47_s29, 8192  ;;  %p3667_p6 = scmp.lt.s32.totalorder %s47_s29, %s47_s29 }
  0x2c   :  { %p3663_p5 = scmp.ne.s32.totalorder %s47_s29, %s3662_s14  ;;  %p3668_p7 = scmp.lt.s32.totalorder %s3662_s14, %s3662_s14 }
  0x2e   :  { %p3669_p8 = por %p3668_p7, %p3667_p6 }
  0x30   :  { %p3670_p9 = pnand %p3669_p8, %p3663_p5 }
  0x32   :  { %3673 = shalt.err (!%p3670_p9)
}
  0x33   :  { %s3709_s0 = smov 128   ;;  %s3710_s15 = smov 8  }
  0x34   :  { %52 = dma.hbm_to_vmem [thread:$0]  %s3874_s3, 8192, %s47_s29, [#allocation5], %s3709_s0, %s3709_s0, %s3710_s15  }
  0x35   :  { %s3711_s18 = smov [#allocation7]   ;;  %s3674_s22 = scalar_lea.hbm %s3876_s5, 2048 }
  0x36   :  { %s60_s19 = sshll.u32 %s3711_s18, 4  ;;  %p3675_p10 = scmp.ne.s32.totalorder %s3876_s5, %s3674_s22  ;;  %s61_s19 = int_to_ptr.vmem [resolvable:$true] %s60_s19 }
  0x37   :  { %p3678_p11 = scmp.lt.u32.totalorder %s3674_s22, %s3876_s5 }
  0x39   :  { %p3680_p12 = pnand %p3678_p11, %p3675_p10 }
  0x3b   :  { %3683 = shalt.err (!%p3680_p12)
}
  0x3c   :  { %s3684_s27 = scalar_lea.vmem %s61_s19, 2048  ;;  %p3689_p0 = scmp.lt.s32.totalorder %s61_s19, %s61_s19 }
  0x3d   :  { %p3685_p13 = scmp.ne.s32.totalorder %s61_s19, %s3684_s27  ;;  %p3690_p1 = scmp.lt.s32.totalorder %s3684_s27, %s3684_s27 }
  0x3f   :  { %p3691_p2 = por %p3690_p1, %p3689_p0 }
  0x41   :  { %p3692_p3 = pnand %p3691_p2, %p3685_p13 }
  0x43   :  { %3695 = shalt.err (!%p3692_p3)
}
  0x44   :  { %s3712_s3 = smov 4  }
  0x45   :  { %66 = dma.hbm_to_vmem [thread:$0]  %s3876_s5, 2048, %s61_s19, [#allocation8], %s3707_s25, %s3707_s25, %s3712_s3  }
  0x46   :  { %3696 = dma.done.wait [#allocation3], 2048  }
  0x47   :  { %3697 = vsyncadd [#allocation3], 4294965248 }
  0x48   :  { %3698 = dma.done.wait [#allocation5], 40960  }
  0x49   :  { %3699 = vsyncadd [#allocation5], 4294926336 }
  0x4a   :  { %3700 = dma.done.wait [#allocation8], 2048  }
  0x4b   :  { %3701 = vsyncadd [#allocation8], 4294965248  ;;  %v3108_v0 = vld [vmem:[#allocation4 + $0x4] ss:$16 sps:$4 sm:$0xff]   ;;  %v3112_v2 = vld [vmem:[#allocation4] ss:$16 sps:$4 sm:$0xff]  }
  0x4c   :  { %v3110_v1 = vld [vmem:[#allocation4 + $0x204] ss:$16 sps:$4 sm:$0xff]   ;;  %1664 = vmatprep.subr.bf16.mxu1 %v3108_v0  ;;  %v3113_v3 = vld [vmem:[#allocation4 + $0x200] ss:$16 sps:$4 sm:$0xff]   ;;  %v83_v46 = vld [vmem:[#allocation2 + $0x8] sm:$0xff]  ;;  %vm2688_vm0 = vcmask 23552  }
  0x4d   :  { %1707 = vmatprep.subr.bf16.mxu0 %v3110_v1  ;;  %v3114_v4 = vld [vmem:[#allocation4 + $0x24] ss:$16 sps:$4 sm:$0xff]   ;;  %1665 = vmatpush1.bf16.msra.mxu1 %v3112_v2  ;;  %v3118_v6 = vld [vmem:[#allocation4 + $0x20] ss:$16 sps:$4 sm:$0xff]   ;;  %v91_v49 = vld [vmem:[#allocation2 + $0x48] sm:$0xff] }
  0x4e   :  { %1708 = vmatpush1.bf16.msra.mxu0 %v3113_v3  ;;  %v3116_v5 = vld [vmem:[#allocation4 + $0x224] ss:$16 sps:$4 sm:$0xff]   ;;  %1666 = vmatprep.subr.bf16.mxu1 %v3114_v4  ;;  %v3119_v7 = vld [vmem:[#allocation4 + $0x220] ss:$16 sps:$4 sm:$0xff]   ;;  %v3804_v50 = vpack.c.bf16 %v91_v49, %v83_v46  ;;  %v85_v51 = vld [vmem:[#allocation2 + $0x18] sm:$0xff] }
  0x4f   :  { %1709 = vmatprep.subr.bf16.mxu0 %v3116_v5  ;;  %v3120_v8 = vld [vmem:[#allocation4 + $0x44] ss:$16 sps:$4 sm:$0xff]   ;;  %v3124_v10 = vld [vmem:[#allocation4 + $0x40] ss:$16 sps:$4 sm:$0xff]   ;;  %v93_v52 = vld [vmem:[#allocation2 + $0x58] sm:$0xff] }
  0x50   :  { %v3122_v9 = vld [vmem:[#allocation4 + $0x244] ss:$16 sps:$4 sm:$0xff]   ;;  %v3125_v11 = vld [vmem:[#allocation4 + $0x240] ss:$16 sps:$4 sm:$0xff]   ;;  %v3806_v55 = vpack.c.bf16 %v93_v52, %v85_v51  ;;  %1696 = vmatprep.mubr.bf16.mxu1 %v3804_v50  ;;  %v3249_v46 = vld [vmem:[#allocation4 + $0xe8] ss:$16 sps:$4 sm:$0xff]  }
  0x51   :  { %1667 = vmatpush1.bf16.msra.mxu1 %v3118_v6  ;;  %v3126_v12 = vld [vmem:[#allocation4 + $0x64] ss:$16 sps:$4 sm:$0xff]   ;;  %v3130_v14 = vld [vmem:[#allocation4 + $0x60] ss:$16 sps:$4 sm:$0xff]   ;;  %v3263_v52 = vld [vmem:[#allocation4 + $0x12c] ss:$16 sps:$4 sm:$0xff]  }
  0x52   :  { %1710 = vmatpush1.bf16.msra.mxu0 %v3119_v7  ;;  %1668 = vmatprep.subr.bf16.mxu1 %v3120_v8  ;;  %v3128_v13 = vld [vmem:[#allocation4 + $0x264] ss:$16 sps:$4 sm:$0xff]   ;;  %v3131_v15 = vld [vmem:[#allocation4 + $0x260] ss:$16 sps:$4 sm:$0xff]  }
  0x53   :  { %1711 = vmatprep.subr.bf16.mxu0 %v3122_v9  ;;  %v3132_v16 = vld [vmem:[#allocation4 + $0x84] ss:$16 sps:$4 sm:$0xff]   ;;  %v3136_v18 = vld [vmem:[#allocation4 + $0x80] ss:$16 sps:$4 sm:$0xff]   ;;  %1739 = vmatprep.mubr.bf16.mxu0 %v3806_v55 }
  0x54   :  { %v3134_v17 = vld [vmem:[#allocation4 + $0x284] ss:$16 sps:$4 sm:$0xff]   ;;  %v3137_v19 = vld [vmem:[#allocation4 + $0x280] ss:$16 sps:$4 sm:$0xff]  }
  0x55   :  { %1669 = vmatpush1.bf16.msra.mxu1 %v3124_v10  ;;  %v3138_v20 = vld [vmem:[#allocation4 + $0xa4] ss:$16 sps:$4 sm:$0xff]   ;;  %v3142_v22 = vld [vmem:[#allocation4 + $0xa0] ss:$16 sps:$4 sm:$0xff]  }
  0x56   :  { %1712 = vmatpush1.bf16.msra.mxu0 %v3125_v11  ;;  %1670 = vmatprep.subr.bf16.mxu1 %v3126_v12  ;;  %v3140_v21 = vld [vmem:[#allocation4 + $0x2a4] ss:$16 sps:$4 sm:$0xff]   ;;  %v3143_v23 = vld [vmem:[#allocation4 + $0x2a0] ss:$16 sps:$4 sm:$0xff]   ;;  %v3209_v11 = vld [vmem:[#allocation4 + $0xc] ss:$16 sps:$4 sm:$0xff]  }
  0x57   :  { %1713 = vmatprep.subr.bf16.mxu0 %v3128_v13  ;;  %v3144_v24 = vld [vmem:[#allocation4 + $0xc4] ss:$16 sps:$4 sm:$0xff]   ;;  %v3148_v26 = vld [vmem:[#allocation4 + $0xc0] ss:$16 sps:$4 sm:$0xff]  }
  0x58   :  { %v3146_v25 = vld [vmem:[#allocation4 + $0x2c4] ss:$16 sps:$4 sm:$0xff]   ;;  %v3149_v27 = vld [vmem:[#allocation4 + $0x2c0] ss:$16 sps:$4 sm:$0xff]  }
  0x59   :  { %1671 = vmatpush1.bf16.msra.mxu1 %v3130_v14  ;;  %v3150_v28 = vld [vmem:[#allocation4 + $0xe4] ss:$16 sps:$4 sm:$0xff]   ;;  %v3154_v30 = vld [vmem:[#allocation4 + $0xe0] ss:$16 sps:$4 sm:$0xff]   ;;  %v3207_v14 = vld [vmem:[#allocation4 + $0x8] ss:$16 sps:$4 sm:$0xff]  }
  0x5a   :  { %1714 = vmatpush1.bf16.msra.mxu0 %v3131_v15  ;;  %1672 = vmatprep.subr.bf16.mxu1 %v3132_v16  ;;  %v3152_v29 = vld [vmem:[#allocation4 + $0x2e4] ss:$16 sps:$4 sm:$0xff]   ;;  %v3155_v31 = vld [vmem:[#allocation4 + $0x2e0] ss:$16 sps:$4 sm:$0xff]  }
  0x5b   :  { %1715 = vmatprep.subr.bf16.mxu0 %v3134_v17  ;;  %v3156_v32 = vld [vmem:[#allocation4 + $0x104] ss:$16 sps:$4 sm:$0xff]   ;;  %v3160_v34 = vld [vmem:[#allocation4 + $0x100] ss:$16 sps:$4 sm:$0xff]   ;;  %v3215_v17 = vld [vmem:[#allocation4 + $0x2c] ss:$16 sps:$4 sm:$0xff]  }
  0x5c   :  { %v3158_v33 = vld [vmem:[#allocation4 + $0x304] ss:$16 sps:$4 sm:$0xff]   ;;  %v3161_v35 = vld [vmem:[#allocation4 + $0x300] ss:$16 sps:$4 sm:$0xff]  }
  0x5d   :  { %1673 = vmatpush1.bf16.msra.mxu1 %v3136_v18  ;;  %v3162_v36 = vld [vmem:[#allocation4 + $0x124] ss:$16 sps:$4 sm:$0xff]   ;;  %v3166_v38 = vld [vmem:[#allocation4 + $0x120] ss:$16 sps:$4 sm:$0xff]  }
  0x5e   :  { %1716 = vmatpush1.bf16.msra.mxu0 %v3137_v19  ;;  %1674 = vmatprep.subr.bf16.mxu1 %v3138_v20  ;;  %v3164_v37 = vld [vmem:[#allocation4 + $0x324] ss:$16 sps:$4 sm:$0xff]   ;;  %v3167_v39 = vld [vmem:[#allocation4 + $0x320] ss:$16 sps:$4 sm:$0xff]   ;;  %v3213_v19 = vld [vmem:[#allocation4 + $0x28] ss:$16 sps:$4 sm:$0xff]  }
  0x5f   :  { %1717 = vmatprep.subr.bf16.mxu0 %v3140_v21  ;;  %v3168_v40 = vld [vmem:[#allocation4 + $0x144] ss:$16 sps:$4 sm:$0xff]   ;;  %v3172_v42 = vld [vmem:[#allocation4 + $0x140] ss:$16 sps:$4 sm:$0xff]   ;;  %v3221_v21 = vld [vmem:[#allocation4 + $0x4c] ss:$16 sps:$4 sm:$0xff]  }
  0x60   :  { %v3170_v41 = vld [vmem:[#allocation4 + $0x344] ss:$16 sps:$4 sm:$0xff]   ;;  %v3173_v43 = vld [vmem:[#allocation4 + $0x340] ss:$16 sps:$4 sm:$0xff]  }
  0x61   :  { %1675 = vmatpush1.bf16.msra.mxu1 %v3142_v22  ;;  %v3174_v44 = vld [vmem:[#allocation4 + $0x164] ss:$16 sps:$4 sm:$0xff]   ;;  %v3178_v47 = vld [vmem:[#allocation4 + $0x160] ss:$16 sps:$4 sm:$0xff]  }
  0x62   :  { %1718 = vmatpush1.bf16.msra.mxu0 %v3143_v23  ;;  %1676 = vmatprep.subr.bf16.mxu1 %v3144_v24  ;;  %v3176_v45 = vld [vmem:[#allocation4 + $0x364] ss:$16 sps:$4 sm:$0xff]   ;;  %v3179_v48 = vld [vmem:[#allocation4 + $0x360] ss:$16 sps:$4 sm:$0xff]   ;;  %v3219_v23 = vld [vmem:[#allocation4 + $0x48] ss:$16 sps:$4 sm:$0xff]  }
  0x63   :  { %1719 = vmatprep.subr.bf16.mxu0 %v3146_v25  ;;  %v3180_v53 = vld [vmem:[#allocation4 + $0x184] ss:$16 sps:$4 sm:$0xff]   ;;  %v3184_v56 = vld [vmem:[#allocation4 + $0x180] ss:$16 sps:$4 sm:$0xff]   ;;  %v3227_v25 = vld [vmem:[#allocation4 + $0x6c] ss:$16 sps:$4 sm:$0xff]  }
  0x64   :  { %v3182_v54 = vld [vmem:[#allocation4 + $0x384] ss:$16 sps:$4 sm:$0xff]   ;;  %v3185_v57 = vld [vmem:[#allocation4 + $0x380] ss:$16 sps:$4 sm:$0xff]  }
  0x65   :  { %1677 = vmatpush1.bf16.msra.mxu1 %v3148_v26  ;;  %v3186_v58 = vld [vmem:[#allocation4 + $0x1a4] ss:$16 sps:$4 sm:$0xff]   ;;  %v3190_v60 = vld [vmem:[#allocation4 + $0x1a0] ss:$16 sps:$4 sm:$0xff]  }
  0x66   :  { %1720 = vmatpush1.bf16.msra.mxu0 %v3149_v27  ;;  %1678 = vmatprep.subr.bf16.mxu1 %v3150_v28  ;;  %v3188_v59 = vld [vmem:[#allocation4 + $0x3a4] ss:$16 sps:$4 sm:$0xff]   ;;  %v3191_v61 = vld [vmem:[#allocation4 + $0x3a0] ss:$16 sps:$4 sm:$0xff]   ;;  %v3225_v27 = vld [vmem:[#allocation4 + $0x68] ss:$16 sps:$4 sm:$0xff]  }
  0x67   :  { %1721 = vmatprep.subr.bf16.mxu0 %v3152_v29  ;;  %v3192_v62 = vld [vmem:[#allocation4 + $0x1c4] ss:$16 sps:$4 sm:$0xff]   ;;  %v3196_v0 = vld [vmem:[#allocation4 + $0x1c0] ss:$16 sps:$4 sm:$0xff]   ;;  %v3233_v29 = vld [vmem:[#allocation4 + $0x8c] ss:$16 sps:$4 sm:$0xff]  }
  0x68   :  { %v3194_v63 = vld [vmem:[#allocation4 + $0x3c4] ss:$16 sps:$4 sm:$0xff]   ;;  %v3197_v1 = vld [vmem:[#allocation4 + $0x3c0] ss:$16 sps:$4 sm:$0xff]  }
  0x69   :  { %1679 = vmatpush1.bf16.msra.mxu1 %v3154_v30  ;;  %v3198_v2 = vld [vmem:[#allocation4 + $0x1e4] ss:$16 sps:$4 sm:$0xff]   ;;  %v3202_v4 = vld [vmem:[#allocation4 + $0x1e0] ss:$16 sps:$4 sm:$0xff]  }
  0x6a   :  { %1722 = vmatpush1.bf16.msra.mxu0 %v3155_v31  ;;  %1680 = vmatprep.subr.bf16.mxu1 %v3156_v32  ;;  %v3200_v3 = vld [vmem:[#allocation4 + $0x3e4] ss:$16 sps:$4 sm:$0xff]   ;;  %v3203_v5 = vld [vmem:[#allocation4 + $0x3e0] ss:$16 sps:$4 sm:$0xff]   ;;  %v3231_v31 = vld [vmem:[#allocation4 + $0x88] ss:$16 sps:$4 sm:$0xff]  }
  0x6b   :  { %1723 = vmatprep.subr.bf16.mxu0 %v3158_v33  ;;  %v82_v6 = vld [vmem:[#allocation2] sm:$0xff]  ;;  %v84_v9 = vld [vmem:[#allocation2 + $0x10] sm:$0xff]  ;;  %v3239_v33 = vld [vmem:[#allocation4 + $0xac] ss:$16 sps:$4 sm:$0xff]  }
  0x6c   :  { %v90_v7 = vld [vmem:[#allocation2 + $0x40] sm:$0xff]  ;;  %v92_v10 = vld [vmem:[#allocation2 + $0x50] sm:$0xff] }
  0x6d   :  { %1681 = vmatpush1.bf16.msra.mxu1 %v3160_v34  ;;  %v3206_v8 = vld [vmem:[#allocation4 + $0x404] ss:$16 sps:$4 sm:$0xff]   ;;  %v3810_v12 = vpack.c.bf16 %v90_v7, %v82_v6  ;;  %v3204_v13 = vld [vmem:[#allocation4 + $0x400] ss:$16 sps:$4 sm:$0xff]   ;;  %v3812_v15 = vpack.c.bf16 %v92_v10, %v84_v9  ;;  %v3285_v7 = vld [vmem:[#allocation4 + $0x1a8] ss:$16 sps:$4 sm:$0xff]  }
  0x6e   :  { %1724 = vmatpush1.bf16.msra.mxu0 %v3161_v35  ;;  %1682 = vmatprep.subr.bf16.mxu1 %v3162_v36  ;;  %v3212_v16 = vld [vmem:[#allocation4 + $0x424] ss:$16 sps:$4 sm:$0xff]   ;;  %v3210_v18 = vld [vmem:[#allocation4 + $0x420] ss:$16 sps:$4 sm:$0xff]   ;;  %v3237_v35 = vld [vmem:[#allocation4 + $0xa8] ss:$16 sps:$4 sm:$0xff]  }
  0x6f   :  { %1725 = vmatprep.subr.bf16.mxu0 %v3164_v37  ;;  %v3218_v20 = vld [vmem:[#allocation4 + $0x444] ss:$16 sps:$4 sm:$0xff]   ;;  %v3216_v22 = vld [vmem:[#allocation4 + $0x440] ss:$16 sps:$4 sm:$0xff]   ;;  %v3245_v37 = vld [vmem:[#allocation4 + $0xcc] ss:$16 sps:$4 sm:$0xff]  }
  0x70   :  { %v3224_v24 = vld [vmem:[#allocation4 + $0x464] ss:$16 sps:$4 sm:$0xff]   ;;  %v3222_v26 = vld [vmem:[#allocation4 + $0x460] ss:$16 sps:$4 sm:$0xff]   ;;  %v3293_v9 = vld [vmem:[#allocation4 + $0x1cc] ss:$16 sps:$4 sm:$0xff]  }
  0x71   :  { %1683 = vmatpush1.bf16.msra.mxu1 %v3166_v38  ;;  %v3230_v28 = vld [vmem:[#allocation4 + $0x484] ss:$16 sps:$4 sm:$0xff]   ;;  %v3228_v30 = vld [vmem:[#allocation4 + $0x480] ss:$16 sps:$4 sm:$0xff]  }
  0x72   :  { %1726 = vmatpush1.bf16.msra.mxu0 %v3167_v39  ;;  %1684 = vmatprep.subr.bf16.mxu1 %v3168_v40  ;;  %v3236_v32 = vld [vmem:[#allocation4 + $0x4a4] ss:$16 sps:$4 sm:$0xff]   ;;  %v3234_v34 = vld [vmem:[#allocation4 + $0x4a0] ss:$16 sps:$4 sm:$0xff]   ;;  %v3243_v39 = vld [vmem:[#allocation4 + $0xc8] ss:$16 sps:$4 sm:$0xff]  }
  0x73   :  { %1727 = vmatprep.subr.bf16.mxu0 %v3170_v41  ;;  %v3242_v36 = vld [vmem:[#allocation4 + $0x4c4] ss:$16 sps:$4 sm:$0xff]   ;;  %v3240_v38 = vld [vmem:[#allocation4 + $0x4c0] ss:$16 sps:$4 sm:$0xff]   ;;  %v87_v40 = vld [vmem:[#allocation2 + $0x28] sm:$0xff] }
  0x74   :  { %v95_v41 = vld [vmem:[#allocation2 + $0x68] sm:$0xff]  ;;  %v3252_v49 = vld [vmem:[#allocation4 + $0x500] ss:$16 sps:$4 sm:$0xff]   ;;  %v3260_v51 = vld [vmem:[#allocation4 + $0x524] ss:$16 sps:$4 sm:$0xff]  }
  0x75   :  { %1685 = vmatpush1.bf16.msra.mxu1 %v3172_v42  ;;  %v3248_v42 = vld [vmem:[#allocation4 + $0x4e4] ss:$16 sps:$4 sm:$0xff]   ;;  %v3282_v6 = vld [vmem:[#allocation4 + $0x5a0] ss:$16 sps:$4 sm:$0xff]  }
  0x76   :  { %1728 = vmatpush1.bf16.msra.mxu0 %v3173_v43  ;;  %1686 = vmatprep.subr.bf16.mxu1 %v3174_v44  ;;  %v3251_v43 = vld [vmem:[#allocation4 + $0xec] ss:$16 sps:$4 sm:$0xff]   ;;  %v3817_v44 = vpack.c.bf16 %v95_v41, %v87_v40  ;;  %v3288_v10 = vld [vmem:[#allocation4 + $0x5c0] ss:$16 sps:$4 sm:$0xff]  }
  0x77   :  { %1729 = vmatprep.subr.bf16.mxu0 %v3176_v45  ;;  %v3246_v45 = vld [vmem:[#allocation4 + $0x4e0] ss:$16 sps:$4 sm:$0xff]   ;;  %v3329_v40 = vld [vmem:[#allocation4 + $0x28c] ss:$16 sps:$4 sm:$0xff]  }
  0x78   :  { %v3324_v41 = vld [vmem:[#allocation4 + $0x680] ss:$16 sps:$4 sm:$0xff]  }
  0x79   :  { %1687 = vmatpush1.bf16.msra.mxu1 %v3178_v47  ;;  %v3254_v47 = vld [vmem:[#allocation4 + $0x504] ss:$16 sps:$4 sm:$0xff]  }
  0x7a   :  { %1730 = vmatpush1.bf16.msra.mxu0 %v3179_v48  ;;  %1688 = vmatprep.subr.bf16.mxu1 %v3180_v53  ;;  %v3257_v48 = vld [vmem:[#allocation4 + $0x10c] ss:$16 sps:$4 sm:$0xff]   ;;  %v3258_v53 = vld [vmem:[#allocation4 + $0x520] ss:$16 sps:$4 sm:$0xff]  }
  0x7b   :  { %1731 = vmatprep.subr.bf16.mxu0 %v3182_v54  ;;  %v3261_v54 = vld [vmem:[#allocation4 + $0x128] ss:$16 sps:$4 sm:$0xff]  }
  0x7d   :  { %1689 = vmatpush1.bf16.msra.mxu1 %v3184_v56  ;;  %v3266_v56 = vld [vmem:[#allocation4 + $0x544] ss:$16 sps:$4 sm:$0xff]  }
  0x7e   :  { %1732 = vmatpush1.bf16.msra.mxu0 %v3185_v57  ;;  %1690 = vmatprep.subr.bf16.mxu1 %v3186_v58  ;;  %v3269_v57 = vld [vmem:[#allocation4 + $0x14c] ss:$16 sps:$4 sm:$0xff]   ;;  %v3264_v58 = vld [vmem:[#allocation4 + $0x540] ss:$16 sps:$4 sm:$0xff]  }
  0x7f   :  { %1733 = vmatprep.subr.bf16.mxu0 %v3188_v59  ;;  %v3267_v59 = vld [vmem:[#allocation4 + $0x148] ss:$16 sps:$4 sm:$0xff]  }
  0x81   :  { %1691 = vmatpush1.bf16.msra.mxu1 %v3190_v60  ;;  %v3272_v60 = vld [vmem:[#allocation4 + $0x564] ss:$16 sps:$4 sm:$0xff]  }
  0x82   :  { %1734 = vmatpush1.bf16.msra.mxu0 %v3191_v61  ;;  %1692 = vmatprep.subr.bf16.mxu1 %v3192_v62  ;;  %v3275_v61 = vld [vmem:[#allocation4 + $0x16c] ss:$16 sps:$4 sm:$0xff]   ;;  %v3270_v62 = vld [vmem:[#allocation4 + $0x560] ss:$16 sps:$4 sm:$0xff]  }
  0x83   :  { %1735 = vmatprep.subr.bf16.mxu0 %v3194_v63  ;;  %v3273_v63 = vld [vmem:[#allocation4 + $0x168] ss:$16 sps:$4 sm:$0xff]  }
  0x85   :  { %1693 = vmatpush1.bf16.msra.mxu1 %v3196_v0  ;;  %v3278_v0 = vld [vmem:[#allocation4 + $0x584] ss:$16 sps:$4 sm:$0xff]  }
  0x86   :  { %1736 = vmatpush1.bf16.msra.mxu0 %v3197_v1  ;;  %1694 = vmatprep.subr.bf16.mxu1 %v3198_v2  ;;  %v3281_v1 = vld [vmem:[#allocation4 + $0x18c] ss:$16 sps:$4 sm:$0xff]   ;;  %v3276_v2 = vld [vmem:[#allocation4 + $0x580] ss:$16 sps:$4 sm:$0xff]  }
  0x87   :  { %1737 = vmatprep.subr.bf16.mxu0 %v3200_v3  ;;  %v3279_v3 = vld [vmem:[#allocation4 + $0x188] ss:$16 sps:$4 sm:$0xff]  }
  0x89   :  { %1695 = vmatpush1.bf16.msra.mxu1 %v3202_v4  ;;  %v3284_v4 = vld [vmem:[#allocation4 + $0x5a4] ss:$16 sps:$4 sm:$0xff]  }
  0x8a   :  { %1738 = vmatpush1.bf16.msra.mxu0 %v3203_v5  ;;  %1836 = vmatprep.subr.bf16.mxu1 %v3209_v11  ;;  %v3287_v5 = vld [vmem:[#allocation4 + $0x1ac] ss:$16 sps:$4 sm:$0xff]   ;;  %v3291_v11 = vld [vmem:[#allocation4 + $0x1c8] ss:$16 sps:$4 sm:$0xff]  }
  0x8b   :  { %1750 = vmatprep.subr.bf16.mxu0 %v3206_v8  ;;  %v3290_v8 = vld [vmem:[#allocation4 + $0x5c4] ss:$16 sps:$4 sm:$0xff]  }
  0x8c   :  { %1697 = vmatmul.mubr.bf16.vlgmr.msra.gmra.mrb[0].mxu1 %v3810_v12 }
  0x8d   :  { %1740 = vmatmul.mubr.bf16.vlgmr.msra.gmra.mrb[0].mxu0 %v3812_v15  ;;  %1837 = vmatpush1.bf16.msra.mxu1 %v3207_v14  ;;  %v3299_v14 = vld [vmem:[#allocation4 + $0x1ec] ss:$16 sps:$4 sm:$0xff]  }
  0x8e   :  { %1751 = vmatpush1.bf16.msra.mxu0 %v3204_v13  ;;  %1838 = vmatprep.subr.bf16.mxu1 %v3215_v17  ;;  %v3296_v13 = vld [vmem:[#allocation4 + $0x5e4] ss:$16 sps:$4 sm:$0xff]   ;;  %v3297_v17 = vld [vmem:[#allocation4 + $0x1e8] ss:$16 sps:$4 sm:$0xff]  }
  0x8f   :  { %1752 = vmatprep.subr.bf16.mxu0 %v3212_v16  ;;  %1868 = vmatprep.mubr.bf16.mxu1 %v3804_v50  ;;  %v3255_v50 = vld [vmem:[#allocation4 + $0x108] ss:$16 sps:$4 sm:$0xff]   ;;  %v3294_v16 = vld [vmem:[#allocation4 + $0x5e0] ss:$16 sps:$4 sm:$0xff]  }
  0x90   :  { %1782 = vmatprep.mubr.bf16.mxu0 %v3817_v44 }
  0x91   :  { %1839 = vmatpush1.bf16.msra.mxu1 %v3213_v19  ;;  %v86_v19 = vld [vmem:[#allocation2 + $0x20] sm:$0xff] }
  0x92   :  { %1753 = vmatpush1.bf16.msra.mxu0 %v3210_v18  ;;  %1840 = vmatprep.subr.bf16.mxu1 %v3221_v21  ;;  %v3302_v18 = vld [vmem:[#allocation4 + $0x604] ss:$16 sps:$4 sm:$0xff]   ;;  %v3305_v21 = vld [vmem:[#allocation4 + $0x20c] ss:$16 sps:$4 sm:$0xff]  }
  0x93   :  { %1754 = vmatprep.subr.bf16.mxu0 %v3218_v20  ;;  %v94_v20 = vld [vmem:[#allocation2 + $0x60] sm:$0xff] }
  0x95   :  { %1841 = vmatpush1.bf16.msra.mxu1 %v3219_v23  ;;  %v3303_v23 = vld [vmem:[#allocation4 + $0x208] ss:$16 sps:$4 sm:$0xff]  }
  0x96   :  { %1755 = vmatpush1.bf16.msra.mxu0 %v3216_v22  ;;  %1842 = vmatprep.subr.bf16.mxu1 %v3227_v25  ;;  %v3300_v22 = vld [vmem:[#allocation4 + $0x600] ss:$16 sps:$4 sm:$0xff]   ;;  %v3308_v25 = vld [vmem:[#allocation4 + $0x624] ss:$16 sps:$4 sm:$0xff]  }
  0x97   :  { %1756 = vmatprep.subr.bf16.mxu0 %v3224_v24  ;;  %v3820_v24 = vpack.c.bf16 %v94_v20, %v86_v19  ;;  %v3389_v19 = vld [vmem:[#allocation4 + $0x3cc] ss:$16 sps:$4 sm:$0xff]   ;;  %v3384_v20 = vld [vmem:[#allocation4 + $0x7c0] ss:$16 sps:$4 sm:$0xff]  }
  0x99   :  { %1843 = vmatpush1.bf16.msra.mxu1 %v3225_v27  ;;  %v3306_v27 = vld [vmem:[#allocation4 + $0x620] ss:$16 sps:$4 sm:$0xff]  }
  0x9a   :  { %1757 = vmatpush1.bf16.msra.mxu0 %v3222_v26  ;;  %1844 = vmatprep.subr.bf16.mxu1 %v3233_v29  ;;  %v3311_v26 = vld [vmem:[#allocation4 + $0x22c] ss:$16 sps:$4 sm:$0xff]   ;;  %v3314_v29 = vld [vmem:[#allocation4 + $0x644] ss:$16 sps:$4 sm:$0xff]  }
  0x9b   :  { %1758 = vmatprep.subr.bf16.mxu0 %v3230_v28  ;;  %v3309_v28 = vld [vmem:[#allocation4 + $0x228] ss:$16 sps:$4 sm:$0xff]  }
  0x9d   :  { %1845 = vmatpush1.bf16.msra.mxu1 %v3231_v31  ;;  %v97_v31 = vld [vmem:[#allocation2 + $0x78] sm:$0xff] }
  0x9e   :  { %1759 = vmatpush1.bf16.msra.mxu0 %v3228_v30  ;;  %1846 = vmatprep.subr.bf16.mxu1 %v3239_v33  ;;  %v89_v30 = vld [vmem:[#allocation2 + $0x38] sm:$0xff] }
  0x9f   :  { %1760 = vmatprep.subr.bf16.mxu0 %v3236_v32  ;;  %v3317_v32 = vld [vmem:[#allocation4 + $0x24c] ss:$16 sps:$4 sm:$0xff]   ;;  %v3824_v33 = vpack.c.bf16 %v97_v31, %v89_v30  ;;  %v3396_v30 = vld [vmem:[#allocation4 + $0x408] ss:$16 sps:$4 sm:$0xff]  }
  0xa1   :  { %1847 = vmatpush1.bf16.msra.mxu1 %v3237_v35  ;;  %v3315_v35 = vld [vmem:[#allocation4 + $0x248] ss:$16 sps:$4 sm:$0xff]  }
  0xa2   :  { %1761 = vmatpush1.bf16.msra.mxu0 %v3234_v34  ;;  %1848 = vmatprep.subr.bf16.mxu1 %v3245_v37  ;;  %v3312_v34 = vld [vmem:[#allocation4 + $0x640] ss:$16 sps:$4 sm:$0xff]  }
  0xa3   :  { %1762 = vmatprep.subr.bf16.mxu0 %v3242_v36  ;;  %v3323_v36 = vld [vmem:[#allocation4 + $0x26c] ss:$16 sps:$4 sm:$0xff]   ;;  %v3318_v37 = vld [vmem:[#allocation4 + $0x660] ss:$16 sps:$4 sm:$0xff]  }
  0xa5   :  { %1849 = vmatpush1.bf16.msra.mxu1 %v3243_v39  ;;  %v3326_v39 = vld [vmem:[#allocation4 + $0x684] ss:$16 sps:$4 sm:$0xff]  }
  0xa6   :  { %1763 = vmatpush1.bf16.msra.mxu0 %v3240_v38  ;;  %1850 = vmatprep.subr.bf16.mxu1 %v3251_v43  ;;  %v3321_v38 = vld [vmem:[#allocation4 + $0x268] ss:$16 sps:$4 sm:$0xff]   ;;  %v3335_v43 = vld [vmem:[#allocation4 + $0x2ac] ss:$16 sps:$4 sm:$0xff]  }
  0xa7   :  { %1764 = vmatprep.subr.bf16.mxu0 %v3248_v42  ;;  %v3332_v42 = vld [vmem:[#allocation4 + $0x6a4] ss:$16 sps:$4 sm:$0xff]  }
  0xa9   :  { %1851 = vmatpush1.bf16.msra.mxu1 %v3249_v46  ;;  %v3333_v46 = vld [vmem:[#allocation4 + $0x2a8] ss:$16 sps:$4 sm:$0xff]  }
  0xaa   :  { %1765 = vmatpush1.bf16.msra.mxu0 %v3246_v45  ;;  %1852 = vmatprep.subr.bf16.mxu1 %v3257_v48  ;;  %v3330_v45 = vld [vmem:[#allocation4 + $0x6a0] ss:$16 sps:$4 sm:$0xff]   ;;  %v3341_v48 = vld [vmem:[#allocation4 + $0x2cc] ss:$16 sps:$4 sm:$0xff]  }
  0xab   :  { %1766 = vmatprep.subr.bf16.mxu0 %v3254_v47  ;;  %v3338_v47 = vld [vmem:[#allocation4 + $0x6c4] ss:$16 sps:$4 sm:$0xff]  }
  0xad   :  { %1853 = vmatpush1.bf16.msra.mxu1 %v3255_v50  ;;  %v3339_v50 = vld [vmem:[#allocation4 + $0x2c8] ss:$16 sps:$4 sm:$0xff]  }
  0xae   :  { %1767 = vmatpush1.bf16.msra.mxu0 %v3252_v49  ;;  %1854 = vmatprep.subr.bf16.mxu1 %v3263_v52  ;;  %v3336_v49 = vld [vmem:[#allocation4 + $0x6c0] ss:$16 sps:$4 sm:$0xff]   ;;  %v3347_v52 = vld [vmem:[#allocation4 + $0x2ec] ss:$16 sps:$4 sm:$0xff]  }
  0xaf   :  { %1768 = vmatprep.subr.bf16.mxu0 %v3260_v51  ;;  %v3344_v51 = vld [vmem:[#allocation4 + $0x6e4] ss:$16 sps:$4 sm:$0xff]  }
  0xb1   :  { %1855 = vmatpush1.bf16.msra.mxu1 %v3261_v54  ;;  %v3345_v54 = vld [vmem:[#allocation4 + $0x2e8] ss:$16 sps:$4 sm:$0xff]  }
  0xb2   :  { %1769 = vmatpush1.bf16.msra.mxu0 %v3258_v53  ;;  %1856 = vmatprep.subr.bf16.mxu1 %v3269_v57  ;;  %v3342_v53 = vld [vmem:[#allocation4 + $0x6e0] ss:$16 sps:$4 sm:$0xff]   ;;  %v3353_v57 = vld [vmem:[#allocation4 + $0x30c] ss:$16 sps:$4 sm:$0xff]  }
  0xb3   :  { %1770 = vmatprep.subr.bf16.mxu0 %v3266_v56  ;;  %v3350_v56 = vld [vmem:[#allocation4 + $0x704] ss:$16 sps:$4 sm:$0xff]  }
  0xb5   :  { %1857 = vmatpush1.bf16.msra.mxu1 %v3267_v59  ;;  %v3351_v59 = vld [vmem:[#allocation4 + $0x308] ss:$16 sps:$4 sm:$0xff]  }
  0xb6   :  { %1771 = vmatpush1.bf16.msra.mxu0 %v3264_v58  ;;  %1858 = vmatprep.subr.bf16.mxu1 %v3275_v61  ;;  %v3348_v58 = vld [vmem:[#allocation4 + $0x700] ss:$16 sps:$4 sm:$0xff]   ;;  %v3359_v61 = vld [vmem:[#allocation4 + $0x32c] ss:$16 sps:$4 sm:$0xff]  }
  0xb7   :  { %1772 = vmatprep.subr.bf16.mxu0 %v3272_v60  ;;  %v3356_v60 = vld [vmem:[#allocation4 + $0x724] ss:$16 sps:$4 sm:$0xff]  }
  0xb9   :  { %1859 = vmatpush1.bf16.msra.mxu1 %v3273_v63  ;;  %v3357_v63 = vld [vmem:[#allocation4 + $0x328] ss:$16 sps:$4 sm:$0xff]  }
  0xba   :  { %1773 = vmatpush1.bf16.msra.mxu0 %v3270_v62  ;;  %1860 = vmatprep.subr.bf16.mxu1 %v3281_v1  ;;  %v3354_v62 = vld [vmem:[#allocation4 + $0x720] ss:$16 sps:$4 sm:$0xff]   ;;  %v3365_v1 = vld [vmem:[#allocation4 + $0x34c] ss:$16 sps:$4 sm:$0xff]  }
  0xbb   :  { %1774 = vmatprep.subr.bf16.mxu0 %v3278_v0  ;;  %v3362_v0 = vld [vmem:[#allocation4 + $0x744] ss:$16 sps:$4 sm:$0xff]  }
  0xbd   :  { %1861 = vmatpush1.bf16.msra.mxu1 %v3279_v3  ;;  %v3363_v3 = vld [vmem:[#allocation4 + $0x348] ss:$16 sps:$4 sm:$0xff]  }
  0xbe   :  { %1775 = vmatpush1.bf16.msra.mxu0 %v3276_v2  ;;  %1862 = vmatprep.subr.bf16.mxu1 %v3287_v5  ;;  %v3360_v2 = vld [vmem:[#allocation4 + $0x740] ss:$16 sps:$4 sm:$0xff]   ;;  %v3371_v5 = vld [vmem:[#allocation4 + $0x36c] ss:$16 sps:$4 sm:$0xff]  }
  0xbf   :  { %1776 = vmatprep.subr.bf16.mxu0 %v3284_v4  ;;  %v3368_v4 = vld [vmem:[#allocation4 + $0x764] ss:$16 sps:$4 sm:$0xff]  }
  0xc1   :  { %1863 = vmatpush1.bf16.msra.mxu1 %v3285_v7  ;;  %v3369_v7 = vld [vmem:[#allocation4 + $0x368] ss:$16 sps:$4 sm:$0xff]  }
  0xc2   :  { %1777 = vmatpush1.bf16.msra.mxu0 %v3282_v6  ;;  %1864 = vmatprep.subr.bf16.mxu1 %v3293_v9  ;;  %v3366_v6 = vld [vmem:[#allocation4 + $0x760] ss:$16 sps:$4 sm:$0xff]   ;;  %v3377_v9 = vld [vmem:[#allocation4 + $0x38c] ss:$16 sps:$4 sm:$0xff]  }
  0xc3   :  { %1778 = vmatprep.subr.bf16.mxu0 %v3290_v8  ;;  %v3374_v8 = vld [vmem:[#allocation4 + $0x784] ss:$16 sps:$4 sm:$0xff]  }
  0xc5   :  { %1865 = vmatpush1.bf16.msra.mxu1 %v3291_v11  ;;  %v3375_v11 = vld [vmem:[#allocation4 + $0x388] ss:$16 sps:$4 sm:$0xff]  }
  0xc6   :  { %1779 = vmatpush1.bf16.msra.mxu0 %v3288_v10  ;;  %1866 = vmatprep.subr.bf16.mxu1 %v3299_v14  ;;  %v3372_v10 = vld [vmem:[#allocation4 + $0x780] ss:$16 sps:$4 sm:$0xff]   ;;  %v3383_v14 = vld [vmem:[#allocation4 + $0x3ac] ss:$16 sps:$4 sm:$0xff]  }
  0xc7   :  { %1780 = vmatprep.subr.bf16.mxu0 %v3296_v13  ;;  %v3380_v13 = vld [vmem:[#allocation4 + $0x7a4] ss:$16 sps:$4 sm:$0xff]  }
  0xc9   :  { %1867 = vmatpush1.bf16.msra.mxu1 %v3297_v17  ;;  %v3381_v17 = vld [vmem:[#allocation4 + $0x3a8] ss:$16 sps:$4 sm:$0xff]  }
  0xca   :  { %1781 = vmatpush1.bf16.msra.mxu0 %v3294_v16  ;;  %1879 = vmatprep.subr.bf16.mxu1 %v3305_v21  ;;  %v3378_v16 = vld [vmem:[#allocation4 + $0x7a0] ss:$16 sps:$4 sm:$0xff]   ;;  %v3387_v21 = vld [vmem:[#allocation4 + $0x3c8] ss:$16 sps:$4 sm:$0xff]  }
  0xcb   :  { %1793 = vmatprep.subr.bf16.mxu0 %v3302_v18  ;;  %v3386_v18 = vld [vmem:[#allocation4 + $0x7c4] ss:$16 sps:$4 sm:$0xff]  }
  0xcc   :  { %1869 = vmatmul.mubr.bf16.vlgmr.msra.gmra.mrb[4].mxu1 %v3810_v12  ;;  %v3320_v12 = vld [vmem:[#allocation4 + $0x664] ss:$16 sps:$4 sm:$0xff]  }
  0xcd   :  { %1783 = vmatmul.mubr.bf16.vlgmr.msra.gmra.mrb[0].mxu0 %v3820_v24  ;;  %1880 = vmatpush1.bf16.msra.mxu1 %v3303_v23  ;;  %v3395_v23 = vld [vmem:[#allocation4 + $0x3ec] ss:$16 sps:$4 sm:$0xff]  }
  0xce   :  { %1794 = vmatpush1.bf16.msra.mxu0 %v3300_v22  ;;  %1881 = vmatprep.subr.bf16.mxu1 %v3311_v26  ;;  %v3392_v22 = vld [vmem:[#allocation4 + $0x7e4] ss:$16 sps:$4 sm:$0xff]   ;;  %v3393_v26 = vld [vmem:[#allocation4 + $0x3e8] ss:$16 sps:$4 sm:$0xff]  }
  0xcf   :  { %1795 = vmatprep.subr.bf16.mxu0 %v3308_v25  ;;  %1911 = vmatprep.mubr.bf16.mxu1 %v3806_v55  ;;  %v3327_v55 = vld [vmem:[#allocation4 + $0x288] ss:$16 sps:$4 sm:$0xff]   ;;  %v3390_v25 = vld [vmem:[#allocation4 + $0x7e0] ss:$16 sps:$4 sm:$0xff]  }
  0xd0   :  { %1825 = vmatprep.mubr.bf16.mxu0 %v3824_v33 }
  0xd1   :  { %1882 = vmatpush1.bf16.msra.mxu1 %v3309_v28  ;;  %v96_v28 = vld [vmem:[#allocation2 + $0x70] sm:$0xff] }
  0xd2   :  { %1796 = vmatpush1.bf16.msra.mxu0 %v3306_v27  ;;  %1883 = vmatprep.subr.bf16.mxu1 %v3317_v32  ;;  %v88_v27 = vld [vmem:[#allocation2 + $0x30] sm:$0xff]  ;;  %v3401_v32 = vld [vmem:[#allocation4 + $0x42c] ss:$16 sps:$4 sm:$0xff]  }
  0xd3   :  { %1797 = vmatprep.subr.bf16.mxu0 %v3314_v29  ;;  %v3398_v29 = vld [vmem:[#allocation4 + $0x40c] ss:$16 sps:$4 sm:$0xff]   ;;  %v3828_v31 = vpack.c.bf16 %v96_v28, %v88_v27  ;;  %v3441_v27 = vld [vmem:[#allocation4 + $0x5e8] ss:$16 sps:$4 sm:$0xff]  }
  0xd4   :  { %v3446_v28 = vld [vmem:[#allocation4 + $0x60c] ss:$16 sps:$4 sm:$0xff]  }
  0xd5   :  { %1884 = vmatpush1.bf16.msra.mxu1 %v3315_v35  ;;  %v3494_v35 = vld [vmem:[#allocation6 + $0x4] ss:$8 sps:$4 sm:$0xff]  }
  0xd6   :  { %1798 = vmatpush1.bf16.msra.mxu0 %v3312_v34  ;;  %1885 = vmatprep.subr.bf16.mxu1 %v3323_v36  ;;  %v3492_v34 = vld [vmem:[#allocation6] ss:$8 sps:$4 sm:$0xff]   ;;  %v3497_v36 = vld [vmem:[#allocation6 + $0x14] ss:$8 sps:$4 sm:$0xff]  }
  0xd7   :  { %1799 = vmatprep.subr.bf16.mxu0 %v3320_v12  ;;  %v3399_v12 = vld [vmem:[#allocation4 + $0x428] ss:$16 sps:$4 sm:$0xff]  }
  0xd9   :  { %1886 = vmatpush1.bf16.msra.mxu1 %v3321_v38  ;;  %v3495_v38 = vld [vmem:[#allocation6 + $0x10] ss:$8 sps:$4 sm:$0xff]  }
  0xda   :  { %1800 = vmatpush1.bf16.msra.mxu0 %v3318_v37  ;;  %1887 = vmatprep.subr.bf16.mxu1 %v3329_v40  ;;  %v3404_v37 = vld [vmem:[#allocation4 + $0x44c] ss:$16 sps:$4 sm:$0xff]   ;;  %v3402_v40 = vld [vmem:[#allocation4 + $0x448] ss:$16 sps:$4 sm:$0xff]  }
  0xdb   :  { %1801 = vmatprep.subr.bf16.mxu0 %v3326_v39  ;;  %v3500_v39 = vld [vmem:[#allocation6 + $0x24] ss:$8 sps:$4 sm:$0xff]  }
  0xdd   :  { %1888 = vmatpush1.bf16.msra.mxu1 %v3327_v55  ;;  %v3405_v55 = vld [vmem:[#allocation4 + $0x468] ss:$16 sps:$4 sm:$0xff]  }
  0xde   :  { %1802 = vmatpush1.bf16.msra.mxu0 %v3324_v41  ;;  %1889 = vmatprep.subr.bf16.mxu1 %v3335_v43  ;;  %v3407_v41 = vld [vmem:[#allocation4 + $0x46c] ss:$16 sps:$4 sm:$0xff]  }
  0xdf   :  { %1803 = vmatprep.subr.bf16.mxu0 %v3332_v42  ;;  %v3410_v42 = vld [vmem:[#allocation4 + $0x48c] ss:$16 sps:$4 sm:$0xff]  }
  0xe0   :  { %v3503_v43 = vld [vmem:[#allocation6 + $0x34] ss:$8 sps:$4 sm:$0xff]  }
  0xe1   :  { %1890 = vmatpush1.bf16.msra.mxu1 %v3333_v46  ;;  %v3408_v46 = vld [vmem:[#allocation4 + $0x488] ss:$16 sps:$4 sm:$0xff]  }
  0xe2   :  { %1804 = vmatpush1.bf16.msra.mxu0 %v3330_v45  ;;  %1891 = vmatprep.subr.bf16.mxu1 %v3341_v48  ;;  %v3506_v45 = vld [vmem:[#allocation6 + $0x44] ss:$8 sps:$4 sm:$0xff]   ;;  %v3504_v48 = vld [vmem:[#allocation6 + $0x40] ss:$8 sps:$4 sm:$0xff]  }
  0xe3   :  { %1805 = vmatprep.subr.bf16.mxu0 %v3338_v47  ;;  %v3413_v47 = vld [vmem:[#allocation4 + $0x4ac] ss:$16 sps:$4 sm:$0xff]  }
  0xe5   :  { %1892 = vmatpush1.bf16.msra.mxu1 %v3339_v50  ;;  %v3411_v50 = vld [vmem:[#allocation4 + $0x4a8] ss:$16 sps:$4 sm:$0xff]  }
  0xe6   :  { %1806 = vmatpush1.bf16.msra.mxu0 %v3336_v49  ;;  %1893 = vmatprep.subr.bf16.mxu1 %v3347_v52  ;;  %v3509_v49 = vld [vmem:[#allocation6 + $0x54] ss:$8 sps:$4 sm:$0xff]   ;;  %v3507_v52 = vld [vmem:[#allocation6 + $0x50] ss:$8 sps:$4 sm:$0xff]  }
  0xe7   :  { %1807 = vmatprep.subr.bf16.mxu0 %v3344_v51  ;;  %v3416_v51 = vld [vmem:[#allocation4 + $0x4cc] ss:$16 sps:$4 sm:$0xff]  }
  0xe9   :  { %1894 = vmatpush1.bf16.msra.mxu1 %v3345_v54  ;;  %v3414_v54 = vld [vmem:[#allocation4 + $0x4c8] ss:$16 sps:$4 sm:$0xff]  }
  0xea   :  { %1808 = vmatpush1.bf16.msra.mxu0 %v3342_v53  ;;  %1895 = vmatprep.subr.bf16.mxu1 %v3353_v57  ;;  %v3512_v53 = vld [vmem:[#allocation6 + $0x64] ss:$8 sps:$4 sm:$0xff]   ;;  %v3510_v57 = vld [vmem:[#allocation6 + $0x60] ss:$8 sps:$4 sm:$0xff]  }
  0xeb   :  { %1809 = vmatprep.subr.bf16.mxu0 %v3350_v56  ;;  %v3419_v56 = vld [vmem:[#allocation4 + $0x4ec] ss:$16 sps:$4 sm:$0xff]  }
  0xed   :  { %1896 = vmatpush1.bf16.msra.mxu1 %v3351_v59  ;;  %v3417_v59 = vld [vmem:[#allocation4 + $0x4e8] ss:$16 sps:$4 sm:$0xff]  }
  0xee   :  { %1810 = vmatpush1.bf16.msra.mxu0 %v3348_v58  ;;  %1897 = vmatprep.subr.bf16.mxu1 %v3359_v61  ;;  %v3515_v58 = vld [vmem:[#allocation6 + $0x74] ss:$8 sps:$4 sm:$0xff]   ;;  %v3513_v61 = vld [vmem:[#allocation6 + $0x70] ss:$8 sps:$4 sm:$0xff]  }
  0xef   :  { %1811 = vmatprep.subr.bf16.mxu0 %v3356_v60  ;;  %v3422_v60 = vld [vmem:[#allocation4 + $0x50c] ss:$16 sps:$4 sm:$0xff]  }
  0xf1   :  { %1898 = vmatpush1.bf16.msra.mxu1 %v3357_v63  ;;  %v3420_v63 = vld [vmem:[#allocation4 + $0x508] ss:$16 sps:$4 sm:$0xff]  }
  0xf2   :  { %1812 = vmatpush1.bf16.msra.mxu0 %v3354_v62  ;;  %1899 = vmatprep.subr.bf16.mxu1 %v3365_v1  ;;  %v3518_v62 = vld [vmem:[#allocation6 + $0x84] ss:$8 sps:$4 sm:$0xff]   ;;  %v3516_v1 = vld [vmem:[#allocation6 + $0x80] ss:$8 sps:$4 sm:$0xff]  }
  0xf3   :  { %1813 = vmatprep.subr.bf16.mxu0 %v3362_v0  ;;  %v3425_v0 = vld [vmem:[#allocation4 + $0x52c] ss:$16 sps:$4 sm:$0xff]  }
  0xf5   :  { %1900 = vmatpush1.bf16.msra.mxu1 %v3363_v3  ;;  %v3423_v3 = vld [vmem:[#allocation4 + $0x528] ss:$16 sps:$4 sm:$0xff]  }
  0xf6   :  { %1814 = vmatpush1.bf16.msra.mxu0 %v3360_v2  ;;  %1901 = vmatprep.subr.bf16.mxu1 %v3371_v5  ;;  %v3521_v2 = vld [vmem:[#allocation6 + $0x94] ss:$8 sps:$4 sm:$0xff]   ;;  %v3519_v5 = vld [vmem:[#allocation6 + $0x90] ss:$8 sps:$4 sm:$0xff]  }
  0xf7   :  { %1815 = vmatprep.subr.bf16.mxu0 %v3368_v4  ;;  %v3428_v4 = vld [vmem:[#allocation4 + $0x54c] ss:$16 sps:$4 sm:$0xff]  }
  0xf9   :  { %1902 = vmatpush1.bf16.msra.mxu1 %v3369_v7  ;;  %v3426_v7 = vld [vmem:[#allocation4 + $0x548] ss:$16 sps:$4 sm:$0xff]  }
  0xfa   :  { %1816 = vmatpush1.bf16.msra.mxu0 %v3366_v6  ;;  %1903 = vmatprep.subr.bf16.mxu1 %v3377_v9  ;;  %v3524_v6 = vld [vmem:[#allocation6 + $0xa4] ss:$8 sps:$4 sm:$0xff]   ;;  %v3522_v9 = vld [vmem:[#allocation6 + $0xa0] ss:$8 sps:$4 sm:$0xff]  }
  0xfb   :  { %1817 = vmatprep.subr.bf16.mxu0 %v3374_v8  ;;  %v3431_v8 = vld [vmem:[#allocation4 + $0x56c] ss:$16 sps:$4 sm:$0xff]  }
  0xfd   :  { %1904 = vmatpush1.bf16.msra.mxu1 %v3375_v11  ;;  %v3429_v11 = vld [vmem:[#allocation4 + $0x568] ss:$16 sps:$4 sm:$0xff]  }
  0xfe   :  { %1818 = vmatpush1.bf16.msra.mxu0 %v3372_v10  ;;  %1905 = vmatprep.subr.bf16.mxu1 %v3383_v14  ;;  %v3527_v10 = vld [vmem:[#allocation6 + $0xb4] ss:$8 sps:$4 sm:$0xff]   ;;  %v3525_v14 = vld [vmem:[#allocation6 + $0xb0] ss:$8 sps:$4 sm:$0xff]  }
  0xff   :  { %1819 = vmatprep.subr.bf16.mxu0 %v3380_v13  ;;  %v3434_v13 = vld [vmem:[#allocation4 + $0x58c] ss:$16 sps:$4 sm:$0xff]  }
 0x101   :  { %1906 = vmatpush1.bf16.msra.mxu1 %v3381_v17  ;;  %v3432_v17 = vld [vmem:[#allocation4 + $0x588] ss:$16 sps:$4 sm:$0xff]  }
 0x102   :  { %1820 = vmatpush1.bf16.msra.mxu0 %v3378_v16  ;;  %1907 = vmatprep.subr.bf16.mxu1 %v3389_v19  ;;  %v3530_v16 = vld [vmem:[#allocation6 + $0xc4] ss:$8 sps:$4 sm:$0xff]   ;;  %v3528_v19 = vld [vmem:[#allocation6 + $0xc0] ss:$8 sps:$4 sm:$0xff]  }
 0x103   :  { %1821 = vmatprep.subr.bf16.mxu0 %v3386_v18  ;;  %v3437_v18 = vld [vmem:[#allocation4 + $0x5ac] ss:$16 sps:$4 sm:$0xff]  }
 0x105   :  { %1908 = vmatpush1.bf16.msra.mxu1 %v3387_v21  ;;  %v3435_v21 = vld [vmem:[#allocation4 + $0x5a8] ss:$16 sps:$4 sm:$0xff]  }
 0x106   :  { %1822 = vmatpush1.bf16.msra.mxu0 %v3384_v20  ;;  %1909 = vmatprep.subr.bf16.mxu1 %v3395_v23  ;;  %v3533_v20 = vld [vmem:[#allocation6 + $0xd4] ss:$8 sps:$4 sm:$0xff]   ;;  %v3531_v23 = vld [vmem:[#allocation6 + $0xd0] ss:$8 sps:$4 sm:$0xff]  }
 0x107   :  { %1823 = vmatprep.subr.bf16.mxu0 %v3392_v22  ;;  %v3440_v22 = vld [vmem:[#allocation4 + $0x5cc] ss:$16 sps:$4 sm:$0xff]  }
 0x109   :  { %1910 = vmatpush1.bf16.msra.mxu1 %v3393_v26  ;;  %v3443_v26 = vld [vmem:[#allocation4 + $0x5ec] ss:$16 sps:$4 sm:$0xff]  }
 0x10a   :  { %1824 = vmatpush1.bf16.msra.mxu0 %v3390_v25  ;;  %1922 = vmatprep.subr.bf16.mxu1 %v3398_v29  ;;  %v3438_v25 = vld [vmem:[#allocation4 + $0x5c8] ss:$16 sps:$4 sm:$0xff]  }
 0x10b   :  { %2416 = vmatprep.subr.bf16.mxu0 %v3494_v35  ;;  %v3444_v29 = vld [vmem:[#allocation4 + $0x608] ss:$16 sps:$4 sm:$0xff]  }
 0x10c   :  { %1912 = vmatmul.mubr.bf16.vlgmr.msra.gmra.mrb[4].mxu1 %v3812_v15  ;;  %v3498_v15 = vld [vmem:[#allocation6 + $0x20] ss:$8 sps:$4 sm:$0xff]  }
 0x10d   :  { %1826 = vmatmul.mubr.bf16.vlgmr.msra.gmra.mrb[0].mxu0 %v3828_v31  ;;  %1923 = vmatpush1.bf16.msra.mxu1 %v3396_v30  ;;  %v3449_v30 = vld [vmem:[#allocation4 + $0x62c] ss:$16 sps:$4 sm:$0xff]   ;;  %v3450_v35 = vld [vmem:[#allocation4 + $0x648] ss:$16 sps:$4 sm:$0xff]  }
 0x10e   :  { %1954 = vmatprep.mubr.bf16.mxu1 %v3817_v44  ;;  %1924 = vmatprep.subr.bf16.mxu1 %v3401_v32  ;;  %v3501_v44 = vld [vmem:[#allocation6 + $0x30] ss:$8 sps:$4 sm:$0xff]  }
 0x10f   :  { %2417 = vmatpush1.bf16.msra.mxu0 %v3492_v34  ;;  %v3447_v32 = vld [vmem:[#allocation4 + $0x628] ss:$16 sps:$4 sm:$0xff]   ;;  %v3452_v34 = vld [vmem:[#allocation4 + $0x64c] ss:$16 sps:$4 sm:$0xff]  }
 0x110   :  { %2418 = vmatprep.subr.bf16.mxu0 %v3497_v36  ;;  %v3453_v36 = vld [vmem:[#allocation4 + $0x668] ss:$16 sps:$4 sm:$0xff]  }
 0x111   :  { %1925 = vmatpush1.bf16.msra.mxu1 %v3399_v12  ;;  %v3455_v12 = vld [vmem:[#allocation4 + $0x66c] ss:$16 sps:$4 sm:$0xff]  }
 0x112   :  { %1926 = vmatprep.subr.bf16.mxu1 %v3404_v37  ;;  %v3458_v37 = vld [vmem:[#allocation4 + $0x68c] ss:$16 sps:$4 sm:$0xff]  }
 0x113   :  { %2419 = vmatpush1.bf16.msra.mxu0 %v3495_v38  ;;  %v3456_v38 = vld [vmem:[#allocation4 + $0x688] ss:$16 sps:$4 sm:$0xff]  }
 0x114   :  { %2420 = vmatprep.subr.bf16.mxu0 %v3500_v39  ;;  %v3461_v39 = vld [vmem:[#allocation4 + $0x6ac] ss:$16 sps:$4 sm:$0xff]  }
 0x115   :  { %1927 = vmatpush1.bf16.msra.mxu1 %v3402_v40  ;;  %v3464_v40 = vld [vmem:[#allocation4 + $0x6cc] ss:$16 sps:$4 sm:$0xff]  }
 0x116   :  { %1928 = vmatprep.subr.bf16.mxu1 %v3407_v41 }
 0x117   :  { %2421 = vmatpush1.bf16.msra.mxu0 %v3498_v15  ;;  %v3536_v15 = vld [vmem:[#allocation6 + $0xe4] ss:$8 sps:$4 sm:$0xff]  }
 0x118   :  { %2422 = vmatprep.subr.bf16.mxu0 %v3503_v43  ;;  %v3534_v43 = vld [vmem:[#allocation6 + $0xe0] ss:$8 sps:$4 sm:$0xff]  }
 0x119   :  { %1929 = vmatpush1.bf16.msra.mxu1 %v3405_v55 }
 0x11a   :  { %1930 = vmatprep.subr.bf16.mxu1 %v3410_v42  ;;  %v3462_v42 = vld [vmem:[#allocation4 + $0x6c8] ss:$16 sps:$4 sm:$0xff]  }
 0x11b   :  { %2423 = vmatpush1.bf16.msra.mxu0 %v3501_v44 }
 0x11c   :  { %2424 = vmatprep.subr.bf16.mxu0 %v3506_v45  ;;  %v3467_v45 = vld [vmem:[#allocation4 + $0x6ec] ss:$16 sps:$4 sm:$0xff]  }
 0x11d   :  { %1931 = vmatpush1.bf16.msra.mxu1 %v3408_v46  ;;  %v3539_v46 = vld [vmem:[#allocation6 + $0xf4] ss:$8 sps:$4 sm:$0xff]  }
 0x11e   :  { %1932 = vmatprep.subr.bf16.mxu1 %v3413_v47  ;;  %v3465_v47 = vld [vmem:[#allocation4 + $0x6e8] ss:$16 sps:$4 sm:$0xff]  }
 0x11f   :  { %2425 = vmatpush1.bf16.msra.mxu0 %v3504_v48  ;;  %v3537_v48 = vld [vmem:[#allocation6 + $0xf0] ss:$8 sps:$4 sm:$0xff]  }
 0x120   :  { %2426 = vmatprep.subr.bf16.mxu0 %v3509_v49  ;;  %v3470_v49 = vld [vmem:[#allocation4 + $0x70c] ss:$16 sps:$4 sm:$0xff]  }
 0x121   :  { %1933 = vmatpush1.bf16.msra.mxu1 %v3411_v50  ;;  %v3468_v50 = vld [vmem:[#allocation4 + $0x708] ss:$16 sps:$4 sm:$0xff]  }
 0x122   :  { %1934 = vmatprep.subr.bf16.mxu1 %v3416_v51  ;;  %v3473_v51 = vld [vmem:[#allocation4 + $0x72c] ss:$16 sps:$4 sm:$0xff]  }
 0x123   :  { %2427 = vmatpush1.bf16.msra.mxu0 %v3507_v52  ;;  %v3542_v52 = vld [vmem:[#allocation6 + $0x104] ss:$8 sps:$4 sm:$0xff]  }
 0x124   :  { %2428 = vmatprep.subr.bf16.mxu0 %v3512_v53  ;;  %v3471_v53 = vld [vmem:[#allocation4 + $0x728] ss:$16 sps:$4 sm:$0xff]  }
 0x125   :  { %1935 = vmatpush1.bf16.msra.mxu1 %v3414_v54  ;;  %v3476_v54 = vld [vmem:[#allocation4 + $0x74c] ss:$16 sps:$4 sm:$0xff]  }
 0x126   :  { %1936 = vmatprep.subr.bf16.mxu1 %v3419_v56  ;;  %v3474_v56 = vld [vmem:[#allocation4 + $0x748] ss:$16 sps:$4 sm:$0xff]  }
 0x127   :  { %2429 = vmatpush1.bf16.msra.mxu0 %v3510_v57  ;;  %v3479_v57 = vld [vmem:[#allocation4 + $0x76c] ss:$16 sps:$4 sm:$0xff]  }
 0x128   :  { %2430 = vmatprep.subr.bf16.mxu0 %v3515_v58  ;;  %v3477_v58 = vld [vmem:[#allocation4 + $0x768] ss:$16 sps:$4 sm:$0xff]  }
 0x129   :  { %1937 = vmatpush1.bf16.msra.mxu1 %v3417_v59  ;;  %v3482_v59 = vld [vmem:[#allocation4 + $0x78c] ss:$16 sps:$4 sm:$0xff]  }
 0x12a   :  { %1938 = vmatprep.subr.bf16.mxu1 %v3422_v60  ;;  %v3480_v60 = vld [vmem:[#allocation4 + $0x788] ss:$16 sps:$4 sm:$0xff]  }
 0x12b   :  { %2431 = vmatpush1.bf16.msra.mxu0 %v3513_v61  ;;  %v3485_v61 = vld [vmem:[#allocation4 + $0x7ac] ss:$16 sps:$4 sm:$0xff]  }
 0x12c   :  { %2432 = vmatprep.subr.bf16.mxu0 %v3518_v62  ;;  %v3483_v62 = vld [vmem:[#allocation4 + $0x7a8] ss:$16 sps:$4 sm:$0xff]  }
 0x12d   :  { %1939 = vmatpush1.bf16.msra.mxu1 %v3420_v63  ;;  %v3488_v63 = vld [vmem:[#allocation4 + $0x7cc] ss:$16 sps:$4 sm:$0xff]  }
 0x12e   :  { %1940 = vmatprep.subr.bf16.mxu1 %v3425_v0  ;;  %v3486_v0 = vld [vmem:[#allocation4 + $0x7c8] ss:$16 sps:$4 sm:$0xff]  }
 0x12f   :  { %2433 = vmatpush1.bf16.msra.mxu0 %v3516_v1  ;;  %v3491_v1 = vld [vmem:[#allocation4 + $0x7ec] ss:$16 sps:$4 sm:$0xff]  }
 0x130   :  { %2434 = vmatprep.subr.bf16.mxu0 %v3521_v2  ;;  %v3489_v2 = vld [vmem:[#allocation4 + $0x7e8] ss:$16 sps:$4 sm:$0xff]  }
 0x131   :  { %1941 = vmatpush1.bf16.msra.mxu1 %v3423_v3  ;;  %v364_v3 = vlaneseq }
 0x132   :  { %1942 = vmatprep.subr.bf16.mxu1 %v3428_v4 }
 0x133   :  { %2435 = vmatpush1.bf16.msra.mxu0 %v3519_v5  ;;  %v3836_v4 = vshrl.u32 %v364_v3, 7  ;;  %v3582_v3 = vld [vmem:[#allocation6 + $0x1e0] ss:$8 sps:$4 sm:$0xff]  }
 0x134   :  { %2436 = vmatprep.subr.bf16.mxu0 %v3524_v6  ;;  %v3842_v6 = vld [vmem:[%s3873_s2] sm:$0xf] }
 0x135   :  { %1943 = vmatpush1.bf16.msra.mxu1 %v3426_v7  ;;  %v366_v5 = vsub.s32 0, %v3836_v4  ;;  %v370_v7 = vsub.s32 1, %v3836_v4 }
 0x136   :  { %1944 = vmatprep.subr.bf16.mxu1 %v3431_v8 }
 0x137   :  { %2437 = vmatpush1.bf16.msra.mxu0 %v3522_v9  ;;  %v367_v8 = vrot.slane %v3842_v6, %v366_v5 }
 0x138   :  { %2438 = vmatprep.subr.bf16.mxu0 %v3527_v10 }
 0x139   :  { %1945 = vmatpush1.bf16.msra.mxu1 %v3429_v11 }
 0x13a   :  { %1946 = vmatprep.subr.bf16.mxu1 %v3434_v13 }
 0x13b   :  { %2439 = vmatpush1.bf16.msra.mxu0 %v3525_v14 }
 0x13c   :  { %2440 = vmatprep.subr.bf16.mxu0 %v3530_v16 }
 0x13d   :  { %1947 = vmatpush1.bf16.msra.mxu1 %v3432_v17 }
 0x13e   :  { %1948 = vmatprep.subr.bf16.mxu1 %v3437_v18 }
 0x13f   :  { %2441 = vmatpush1.bf16.msra.mxu0 %v3528_v19 }
 0x140   :  { %2442 = vmatprep.subr.bf16.mxu0 %v3533_v20 }
 0x141   :  { %1949 = vmatpush1.bf16.msra.mxu1 %v3435_v21 }
 0x142   :  { %1950 = vmatprep.subr.bf16.mxu1 %v3440_v22 }
 0x143   :  { %2443 = vmatpush1.bf16.msra.mxu0 %v3531_v23 }
 0x144   :  { %2444 = vmatprep.subr.bf16.mxu0 %v3536_v15  ;;  %v3549_v15 = vld [vmem:[#allocation6 + $0x130] ss:$8 sps:$4 sm:$0xff]  }
 0x145   :  { %1951 = vmatpush1.bf16.msra.mxu1 %v3438_v25 }
 0x146   :  { %1952 = vmatprep.subr.bf16.mxu1 %v3443_v26 }
 0x147   :  { %2445 = vmatpush1.bf16.msra.mxu0 %v3534_v43  ;;  %v3596_v43 = vld [vmem:[#allocation7 + $0x60] sm:$0xff]  }
 0x148   :  { %2446 = vmatprep.subr.bf16.mxu0 %v3539_v46  ;;  %v3597_v46 = vld [vmem:[#allocation7 + $0x20] sm:$0xff]  }
 0x149   :  { %1953 = vmatpush1.bf16.msra.mxu1 %v3441_v27 }
 0x14a   :  { %1965 = vmatprep.subr.bf16.mxu1 %v3446_v28 }
 0x14b   :  { %2447 = vmatpush1.bf16.msra.mxu0 %v3537_v48  ;;  %v3555_v48 = vld [vmem:[#allocation6 + $0x150] ss:$8 sps:$4 sm:$0xff]  }
 0x14c   :  { %1955 = vmatmul.mubr.bf16.vlgmr.msra.gmra.mrb[4].mxu1 %v3820_v24  ;;  %v3459_v24 = vld [vmem:[#allocation4 + $0x6a8] ss:$16 sps:$4 sm:$0xff]   ;;  %2459 = vmatprep.subr.bf16.mxu0 %v3542_v52 }
 0x14d   :  { %1966 = vmatpush1.bf16.msra.mxu1 %v3444_v29  ;;  %1997 = vmatprep.mubr.bf16.mxu1 %v3824_v33  ;;  %v3561_v52 = vld [vmem:[#allocation6 + $0x170] ss:$8 sps:$4 sm:$0xff]  }
 0x14e   :  { %1967 = vmatprep.subr.bf16.mxu1 %v3449_v30  ;;  %v3540_v30 = vld [vmem:[#allocation6 + $0x100] ss:$8 sps:$4 sm:$0xff]  }
 0x151   :  { %1968 = vmatpush1.bf16.msra.mxu1 %v3447_v32  ;;  %v3545_v32 = vld [vmem:[#allocation6 + $0x114] ss:$8 sps:$4 sm:$0xff]  }
 0x152   :  { %1969 = vmatprep.subr.bf16.mxu1 %v3452_v34  ;;  %v3588_v34 = vld [vmem:[#allocation7 + $0x40] sm:$0xff]  }
 0x155   :  { %1970 = vmatpush1.bf16.msra.mxu1 %v3450_v35  ;;  %v3589_v35 = vld [vmem:[#allocation7] sm:$0xff]  }
 0x156   :  { %1971 = vmatprep.subr.bf16.mxu1 %v3455_v12  ;;  %v3590_v12 = vld [vmem:[#allocation7 + $0x48] sm:$0xff]  }
 0x159   :  { %1972 = vmatpush1.bf16.msra.mxu1 %v3453_v36  ;;  %v3543_v36 = vld [vmem:[#allocation6 + $0x110] ss:$8 sps:$4 sm:$0xff]  }
 0x15a   :  { %1973 = vmatprep.subr.bf16.mxu1 %v3458_v37  ;;  %v3548_v37 = vld [vmem:[#allocation6 + $0x124] ss:$8 sps:$4 sm:$0xff]  }
 0x15d   :  { %1974 = vmatpush1.bf16.msra.mxu1 %v3456_v38  ;;  %v3591_v38 = vld [vmem:[#allocation7 + $0x8] sm:$0xff]  }
 0x15e   :  { %1975 = vmatprep.subr.bf16.mxu1 %v3461_v39  ;;  %v3592_v39 = vld [vmem:[#allocation7 + $0x50] sm:$0xff]  }
 0x15f   :  { %v1698_v41 = vpop.f32.mrb[0].mxu1 }
 0x160   :  { %v1700_v33 = vpop.f32.mrb[1].mxu1  ;;  %v1699_v9 = vadd.f32 %v1698_v41, %v367_v8  ;;  %v3593_v41 = vld [vmem:[#allocation7 + $0x10] sm:$0xff]  }
 0x161   :  { %v1702_v55 = vpop.f32.mrb[2].mxu1  ;;  %1976 = vmatpush1.bf16.msra.mxu1 %v3459_v24  ;;  %v3546_v24 = vld [vmem:[#allocation6 + $0x120] ss:$8 sps:$4 sm:$0xff]  }
 0x162   :  { %v1704_v44 = vpop.f32.mrb[3].mxu1  ;;  %1977 = vmatprep.subr.bf16.mxu1 %v3464_v40  ;;  %v1703_v13 = vadd.f32 %v1702_v55, %v367_v8  ;;  %v3551_v40 = vld [vmem:[#allocation6 + $0x134] ss:$8 sps:$4 sm:$0xff]   ;;  %v3554_v55 = vld [vmem:[#allocation6 + $0x144] ss:$8 sps:$4 sm:$0xff]  }
 0x163   :  { %v3587_v8 = vld [vmem:[#allocation6 + $0x1f4] ss:$8 sps:$4 sm:$0xff]  }
 0x165   :  { %1978 = vmatpush1.bf16.msra.mxu1 %v3462_v42  ;;  %v3595_v42 = vld [vmem:[#allocation7 + $0x18] sm:$0xff]  }
 0x166   :  { %1979 = vmatprep.subr.bf16.mxu1 %v3467_v45  ;;  %v3557_v45 = vld [vmem:[#allocation6 + $0x154] ss:$8 sps:$4 sm:$0xff]  }
 0x169   :  { %1980 = vmatpush1.bf16.msra.mxu1 %v3465_v47  ;;  %v3598_v47 = vld [vmem:[#allocation7 + $0x68] sm:$0xff]  }
 0x16a   :  { %1981 = vmatprep.subr.bf16.mxu1 %v3470_v49  ;;  %v3560_v49 = vld [vmem:[#allocation6 + $0x164] ss:$8 sps:$4 sm:$0xff]  }
 0x16d   :  { %1982 = vmatpush1.bf16.msra.mxu1 %v3468_v50  ;;  %v3558_v50 = vld [vmem:[#allocation6 + $0x160] ss:$8 sps:$4 sm:$0xff]  }
 0x16e   :  { %1983 = vmatprep.subr.bf16.mxu1 %v3473_v51  ;;  %v3563_v51 = vld [vmem:[#allocation6 + $0x174] ss:$8 sps:$4 sm:$0xff]  }
 0x171   :  { %1984 = vmatpush1.bf16.msra.mxu1 %v3471_v53  ;;  %v3566_v53 = vld [vmem:[#allocation6 + $0x184] ss:$8 sps:$4 sm:$0xff]  }
 0x172   :  { %1985 = vmatprep.subr.bf16.mxu1 %v3476_v54  ;;  %v3564_v54 = vld [vmem:[#allocation6 + $0x180] ss:$8 sps:$4 sm:$0xff]  }
 0x175   :  { %1986 = vmatpush1.bf16.msra.mxu1 %v3474_v56  ;;  %v3569_v56 = vld [vmem:[#allocation6 + $0x194] ss:$8 sps:$4 sm:$0xff]  }
 0x176   :  { %1987 = vmatprep.subr.bf16.mxu1 %v3479_v57  ;;  %v3567_v57 = vld [vmem:[#allocation6 + $0x190] ss:$8 sps:$4 sm:$0xff]  }
 0x179   :  { %1988 = vmatpush1.bf16.msra.mxu1 %v3477_v58  ;;  %v3572_v58 = vld [vmem:[#allocation6 + $0x1a4] ss:$8 sps:$4 sm:$0xff]  }
 0x17a   :  { %1989 = vmatprep.subr.bf16.mxu1 %v3482_v59  ;;  %v3570_v59 = vld [vmem:[#allocation6 + $0x1a0] ss:$8 sps:$4 sm:$0xff]  }
 0x17d   :  { %1990 = vmatpush1.bf16.msra.mxu1 %v3480_v60  ;;  %v3575_v60 = vld [vmem:[#allocation6 + $0x1b4] ss:$8 sps:$4 sm:$0xff]  }
 0x17e   :  { %1991 = vmatprep.subr.bf16.mxu1 %v3485_v61  ;;  %v3573_v61 = vld [vmem:[#allocation6 + $0x1b0] ss:$8 sps:$4 sm:$0xff]  }
 0x181   :  { %1992 = vmatpush1.bf16.msra.mxu1 %v3483_v62  ;;  %v3578_v62 = vld [vmem:[#allocation6 + $0x1c4] ss:$8 sps:$4 sm:$0xff]  }
 0x182   :  { %1993 = vmatprep.subr.bf16.mxu1 %v3488_v63  ;;  %v3576_v63 = vld [vmem:[#allocation6 + $0x1c0] ss:$8 sps:$4 sm:$0xff]  }
 0x185   :  { %1994 = vmatpush1.bf16.msra.mxu1 %v3486_v0  ;;  %v3581_v0 = vld [vmem:[#allocation6 + $0x1d4] ss:$8 sps:$4 sm:$0xff]  }
 0x186   :  { %1995 = vmatprep.subr.bf16.mxu1 %v3491_v1  ;;  %v3579_v1 = vld [vmem:[#allocation6 + $0x1d0] ss:$8 sps:$4 sm:$0xff]  }
 0x189   :  { %1996 = vmatpush1.bf16.msra.mxu1 %v3489_v2  ;;  %v3584_v2 = vld [vmem:[#allocation6 + $0x1e4] ss:$8 sps:$4 sm:$0xff]  }
 0x18a   :  { %3035 = vmatprep.subr.bf16.mxu1 %v3588_v34  ;;  %v3602_v34 = vld [vmem:[#allocation7 + $0x78] sm:$0xff]  }
 0x18c   :  { %1998 = vmatmul.mubr.bf16.vlgmr.msra.gmra.mrb[4].mxu1 %v3828_v31  ;;  %v371_v31 = vrot.slane %v3842_v6, %v370_v7 }
 0x18d   :  { %3036 = vmatpush3.bf16.msra.mxu1 %v3589_v35  ;;  %v3603_v35 = vld [vmem:[#allocation7 + $0x38] sm:$0xff]  }
 0x18e   :  { %v1701_v10 = vadd.f32 %v1700_v33, %v371_v31  ;;  %v1705_v17 = vadd.f32 %v1704_v44, %v371_v31  ;;  %3037 = vmatprep.subr.bf16.mxu1 %v3590_v12  ;;  %v3594_v33 = vld [vmem:[#allocation7 + $0x58] sm:$0xff]   ;;  %v3552_v44 = vld [vmem:[#allocation6 + $0x140] ss:$8 sps:$4 sm:$0xff]  }
 0x18f   :  { %v3585_v31 = vld [vmem:[#allocation6 + $0x1f0] ss:$8 sps:$4 sm:$0xff]   ;;  %v2084_v12 = vld [vmem:[%s3875_s4] sm:$0x3] }
 0x191   :  { %3038 = vmatpush3.bf16.msra.mxu1 %v3591_v38 }
 0x192   :  { %3039 = vmatprep.subr.bf16.mxu1 %v3592_v39 }
 0x195   :  { %3040 = vmatpush3.bf16.msra.mxu1 %v3593_v41 }
 0x196   :  { %3041 = vmatprep.subr.bf16.mxu1 %v3594_v33 }
 0x199   :  { %3042 = vmatpush3.bf16.msra.mxu1 %v3595_v42 }
 0x19a   :  { %3043 = vmatprep.subr.bf16.mxu1 %v3596_v43 }
 0x19d   :  { %3044 = vmatpush3.bf16.msra.mxu1 %v3597_v46 }
 0x19e   :  { %3045 = vmatprep.subr.bf16.mxu1 %v3598_v47 }
 0x1e0   :  { %v1827_v11 = vpop.f32.mrb[0].mxu0 }
 0x1e1   :  { %v3058_v14 = vadd.f32 %v1827_v11, %v1699_v9  ;;  %v1829_v16 = vpop.f32.mrb[1].mxu0  ;;  %v374_v9 = vsub.s32 2, %v3836_v4 }
 0x1e2   :  { %v3060_v18 = vadd.f32 %v1829_v16, %v1701_v10  ;;  %v1831_v19 = vpop.f32.mrb[2].mxu0  ;;  %v378_v10 = vsub.s32 3, %v3836_v4  ;;  %v3034_v4 = vld [vmem:[%s3877_s6] ss:$0 sm:$0xff] }
 0x1e3   :  { %v3062_v20 = vadd.f32 %v1831_v19, %v1703_v13  ;;  %v1833_v21 = vpop.f32.mrb[3].mxu0  ;;  %v2008_v23 = vmax.f32 %v3058_v14, 0.0  ;;  %v375_v11 = vrot.slane %v3842_v6, %v374_v9 }
 0x1e4   :  { %v3064_v22 = vadd.f32 %v1833_v21, %v1705_v17  ;;  %v2009_v26 = vmax.f32 %v3060_v18, 0.0  ;;  %v379_v13 = vrot.slane %v3842_v6, %v378_v10  ;;  %v3601_v6 = vld [vmem:[#allocation7 + $0x30] sm:$0xff]  }
 0x1e5   :  { %v2012_v25 = vmax.f32 %v3062_v20, 0.0 }
 0x1e6   :  { %v2013_v27 = vmax.f32 %v3064_v22, 0.0 }
 0x1e7   :  { %v2016_v28 = vpack.c.bf16 %v2012_v25, %v2008_v23 }
 0x1e8   :  { %v2017_v29 = vpack.c.bf16 %v2013_v27, %v2009_v26 }
 0x1ea   :  { %2448 = vmatprep.mubr.bf16.mxu0 %v2017_v29 }
 0x1eb   :  { %2449 = vmatmul.mubr.bf16.vlgmr.msra.gmra.mrb[4].mxu0 %v2016_v28 }
 0x1ec   :  { %2460 = vmatpush1.bf16.msra.mxu0 %v3540_v30  ;;  %v3599_v30 = vld [vmem:[#allocation7 + $0x28] sm:$0xff]  }
 0x1ed   :  { %2461 = vmatprep.subr.bf16.mxu0 %v3545_v32  ;;  %3046 = vmatpush3.bf16.msra.mxu1 %v3599_v30  ;;  %v3600_v32 = vld [vmem:[#allocation7 + $0x70] sm:$0xff]  }
 0x1ee   :  { %3047 = vmatprep.subr.bf16.mxu1 %v3600_v32 }
 0x1f0   :  { %2462 = vmatpush1.bf16.msra.mxu0 %v3543_v36  ;;  %v2089_v36 = vrot.slane %v2084_v12, %v366_v5 }
 0x1f1   :  { %2463 = vmatprep.subr.bf16.mxu0 %v3548_v37  ;;  %3048 = vmatpush3.bf16.msra.mxu1 %v3601_v6  ;;  %v2093_v37 = vrot.slane %v2084_v12, %v370_v7 }
 0x1f2   :  { %3049 = vmatprep.subr.bf16.mxu1 %v3602_v34 }
 0x1f4   :  { %2464 = vmatpush1.bf16.msra.mxu0 %v3546_v24 }
 0x1f5   :  { %2465 = vmatprep.subr.bf16.mxu0 %v3551_v40  ;;  %3050 = vmatpush3.bf16.msra.mxu1 %v3603_v35 }
 0x1f8   :  { %2466 = vmatpush1.bf16.msra.mxu0 %v3549_v15 }
 0x1f9   :  { %2467 = vmatprep.subr.bf16.mxu0 %v3554_v55 }
 0x1fc   :  { %2468 = vmatpush1.bf16.msra.mxu0 %v3552_v44 }
 0x1fd   :  { %2469 = vmatprep.subr.bf16.mxu0 %v3557_v45 }
 0x200   :  { %2470 = vmatpush1.bf16.msra.mxu0 %v3555_v48 }
 0x201   :  { %2471 = vmatprep.subr.bf16.mxu0 %v3560_v49 }
 0x204   :  { %2472 = vmatpush1.bf16.msra.mxu0 %v3558_v50 }
 0x205   :  { %2473 = vmatprep.subr.bf16.mxu0 %v3563_v51 }
 0x208   :  { %2474 = vmatpush1.bf16.msra.mxu0 %v3561_v52 }
 0x209   :  { %2475 = vmatprep.subr.bf16.mxu0 %v3566_v53 }
 0x20c   :  { %2476 = vmatpush1.bf16.msra.mxu0 %v3564_v54 }
 0x20d   :  { %2477 = vmatprep.subr.bf16.mxu0 %v3569_v56 }
 0x210   :  { %2478 = vmatpush1.bf16.msra.mxu0 %v3567_v57 }
 0x211   :  { %2479 = vmatprep.subr.bf16.mxu0 %v3572_v58 }
 0x214   :  { %2480 = vmatpush1.bf16.msra.mxu0 %v3570_v59 }
 0x215   :  { %2481 = vmatprep.subr.bf16.mxu0 %v3575_v60 }
 0x218   :  { %2482 = vmatpush1.bf16.msra.mxu0 %v3573_v61 }
 0x219   :  { %2483 = vmatprep.subr.bf16.mxu0 %v3578_v62 }
 0x21c   :  { %2484 = vmatpush1.bf16.msra.mxu0 %v3576_v63 }
 0x21d   :  { %2485 = vmatprep.subr.bf16.mxu0 %v3581_v0 }
 0x220   :  { %2486 = vmatpush1.bf16.msra.mxu0 %v3579_v1 }
 0x221   :  { %2487 = vmatprep.subr.bf16.mxu0 %v3584_v2 }
 0x224   :  { %2488 = vmatpush1.bf16.msra.mxu0 %v3582_v3 }
 0x225   :  { %2489 = vmatprep.subr.bf16.mxu0 %v3587_v8 }
 0x228   :  { %2490 = vmatpush1.bf16.msra.mxu0 %v3585_v31 }
 0x25f   :  { %v1999_v14 = vpop.f32.mrb[4].mxu1 }
 0x260   :  { %v3065_v16 = vadd.f32 %v1999_v14, %v375_v11  ;;  %v2001_v17 = vpop.f32.mrb[5].mxu1 }
 0x261   :  { %v3066_v18 = vadd.f32 %v2001_v17, %v379_v13  ;;  %v2003_v19 = vpop.f32.mrb[6].mxu1 }
 0x262   :  { %v3067_v20 = vadd.f32 %v2003_v19, %v375_v11  ;;  %v2005_v21 = vpop.f32.mrb[7].mxu1  ;;  %v2010_v23 = vmax.f32 %v3065_v16, 0.0 }
 0x263   :  { %v3068_v22 = vadd.f32 %v2005_v21, %v379_v13  ;;  %v2011_v26 = vmax.f32 %v3066_v18, 0.0 }
 0x264   :  { %v2014_v25 = vmax.f32 %v3067_v20, 0.0 }
 0x265   :  { %v2015_v27 = vmax.f32 %v3068_v22, 0.0 }
 0x266   :  { %v2018_v28 = vpack.c.bf16 %v2014_v25, %v2010_v23 }
 0x267   :  { %v2019_v29 = vpack.c.bf16 %v2015_v27, %v2011_v26 }
 0x269   :  { %2491 = vmatprep.mubr.bf16.mxu0 %v2019_v29 }
 0x26a   :  { %2492 = vmatmul.mubr.bf16.vlgmr.msra.gmra.mrb[4].mxu0 %v2018_v28 }
 0x33d   :  { %v2493_v38 = vpop.f32.mrb[4].mxu0 }
 0x33e   :  { %v3069_v39 = vadd.f32 %v2493_v38, %v2089_v36  ;;  %v2495_v24 = vpop.f32.mrb[5].mxu0 }
 0x33f   :  { %v3070_v40 = vadd.f32 %v2495_v24, %v2093_v37  ;;  %v2497_v41 = vpop.f32.mrb[6].mxu0 }
 0x340   :  { %v3071_v33 = vadd.f32 %v2497_v41, %v2089_v36  ;;  %v2499_v15 = vpop.f32.mrb[7].mxu0  ;;  %v2502_v42 = vmax.f32 %v3069_v39, 0.0 }
 0x341   :  { %v3072_v55 = vadd.f32 %v2499_v15, %v2093_v37  ;;  %v2503_v44 = vmax.f32 %v3070_v40, 0.0 }
 0x342   :  { %v2504_v43 = vmax.f32 %v3071_v33, 0.0 }
 0x343   :  { %v2505_v45 = vmax.f32 %v3072_v55, 0.0 }
 0x344   :  { %v2506_v46 = vpack.c.bf16 %v2504_v43, %v2502_v42 }
 0x345   :  { %v2507_v47 = vpack.c.bf16 %v2505_v45, %v2503_v44 }
 0x347   :  { %2668 = vmatprep.mubr.bf16.mxu1 %v2507_v47 }
 0x348   :  { %2669 = vmatmul.mubr.bf16.vlgmr.msra.gmra.mrb[8].mxu1 %v2506_v46 }
 0x41b   :  { %v3051_v5 = vpop.f32.mrb[8].mxu1 }
 0x41c   :  { %v3052_v48 = vpop.f32.mrb[9].mxu1 }
 0x41d   :  { %v3053_v7 = vadd.f32 %v3052_v48, %v3051_v5  ;;  %v3054_v49 = vpop.f32.mrb[10].mxu1 }
 0x41e   :  { %v3055_v50 = vpop.f32.mrb[11].mxu1 }
 0x41f   :  { %v2684_v51 = vadd.f32 %v3053_v7, %v3034_v4  ;;  %v3056_v52 = vadd.f32 %v3055_v50, %v3054_v49 }
 0x421   :  { %3604 = vtanh.f32 %v2684_v51  ;;  %v2685_v53 = vadd.f32 %v3056_v52, %v3034_v4 }
 0x423   :  { %3606 = vtanh.f32 %v2685_v53 }
 0x42b   :  { %v3605_v54 = vpop.eup %3604 }
 0x42c   :  { %2689 = vst.msk [vmem:[%s3878_s7] sm:$0xff] %vm2688_vm0, %v3605_v54 }
 0x42d   :  { %v3607_v56 = vpop.eup %3606 }
 0x42e   :  { %2690 = vst.msk [vmem:[%s3878_s7 + $0x8] sm:$0xff] %vm2688_vm0, %v3607_v56 }
 0x42f   :  { %2695 = vsyncpa [#allocation3], 1 }
 0x430   :  { %2696 = vsyncpa [#allocation5], 1 }
 0x431   :  { %2697 = vsyncpa [#allocation8], 1 }

</bundles_post_ra>
